<compile_context>
chip_gen: v7x
topology: tpu7x:2x2x1
jax: 0.10.0
libtpu: 0.0.40
codegen_flags: <defaults>
</compile_context>

<pallas_src>
import functools

import jax
import jax.numpy as jnp
from jax import lax
from jax.experimental import pallas as pl
from jax.experimental.pallas import tpu as pltpu

_NN = (((1,), (0,)), ((), ()))   # A(M,K) @ B(K,N)
_NT = (((1,), (1,)), ((), ()))   # A(M,K) @ B(N,K)^T


def _spatial_nl_kernel(xq_ref, p_ref, g_ref, wt_ref, wz_ref, shift_ref, o_ref,
                       *, n_true, n_pad, compute_dtype):
    x_q = xq_ref[0]                                   # (C, TQ) f32 query tile

    # t-projection of the query tile (1/sqrt(planes) folded into wt on host):
    # (P8, C) @ (C, TQ) -> (P8, TQ)
    t = lax.dot_general(wt_ref[...], x_q.astype(compute_dtype), _NN,
                        preferred_element_type=jnp.float32)
    t_qp = t.astype(compute_dtype).T                  # (TQ, P8): cast before transpose

    p = p_ref[0]                                      # (P8, N) key proj (precomputed)
    g = g_ref[0]                                      # (P8, N) value proj (precomputed)

    # attention scores for this query tile: att[q, k] = sum_p t[p, q] * p[p, k]
    att = lax.dot_general(t_qp, p, _NN,
                          preferred_element_type=jnp.float32)        # (TQ, N)

    if n_pad != n_true:                               # mask zero-padded key columns
        key_idx = lax.broadcasted_iota(jnp.int32, att.shape, 1)
        att = jnp.where(key_idx >= n_true, jnp.float32(-1e30), att)

    # row-wise softmax in f32; normalization deferred to the small y tile
    m = jnp.max(att, axis=-1, keepdims=True)
    e = jnp.exp(att - m)                              # (TQ, N) unnormalized probs
    l = jnp.sum(e, axis=-1, keepdims=True)            # (TQ, 1)

    # aggregate values on unnormalized exponentials, then exact normalize:
    # y[q, p] = (sum_k e[q, k] * g[p, k]) / l[q]
    y = lax.dot_general(e.astype(compute_dtype), g, _NT,
                        preferred_element_type=jnp.float32)          # (TQ, P8)
    y = y / l                                         # exact divide on the small tile

    # output 1x1 conv (BN scale pre-folded): z[c, q] = sum_p wz[c, p] * y[q, p]
    z = lax.dot_general(wz_ref[...], y.astype(compute_dtype), _NT,
                        preferred_element_type=jnp.float32)          # (C, TQ)

    # BN shift + residual in f32; lane-dense store (TQ is a multiple of 128)
    o_ref[0] = (z + shift_ref[...] + x_q).astype(o_ref.dtype)


def _compute_dtype():
    """bf16 MXU matmuls on real TPUs; f32 fallback elsewhere (interpret/CPU)."""
    try:
        if jax.default_backend() == "tpu":
            return jnp.bfloat16
    except Exception:
        pass
    return jnp.float32


def _vmem_budget_bytes():
    """Generation-aware VMEM budget (v7x: 64 MiB physical, v5e/v6e: 128 MiB)."""
    try:
        if pltpu.is_tpu_device():
            cap = int(pltpu.get_tpu_info().vmem_capacity_bytes)
            return int(min(max(cap - (24 << 20), 40 << 20), 96 << 20))
    except Exception:
        pass
    return 40 << 20     # v7x-safe default when the hardware can't be queried


def _estimate_vmem(tq, n, c, p8, dsize):
    f32 = 4
    return (2 * 2 * p8 * n * dsize              # p + g slabs (double-buffered)
            + 2 * 2 * c * tq * f32              # query tile + output tile (double-buffered)
            + 3 * tq * n * f32                  # scores / exp / cast scratch
            + 4 * tq * p8 * f32                 # t / t^T / y / y-cast
            + 2 * c * tq * f32                  # z + epilogue temporaries
            + 2 * (2 * p8 * c * dsize + c * f32))   # weights + shift
    # NOTE: grid-invariant inputs are counted double-buffered (pessimistic).


def _pick_query_tile(n_pad, c, p8, dsize, budget_bytes):
    """Largest query tile (multiple of 128, divides padded N) fitting the budget."""
    cands = [tq for tq in (512, 256, 128) if n_pad % tq == 0] or [n_pad]
    for tq in cands:
        est = _estimate_vmem(tq, n_pad, c, p8, dsize)
        if est <= budget_bytes:
            return tq, est
    tq = cands[-1]
    return tq, _estimate_vmem(tq, n_pad, c, p8, dsize)


def spatial_nl_forward(x_nchw, params, *, use_scale=False):
    """x_nchw: (B, C_in, H, W) float32. Returns (B, C_in, H, W) float32."""
    B, C, H, W = x_nchw.shape
    N = H * W
    P = params["wt"].shape[0]
    P8 = -(-P // 8) * 8
    N_pad = -(-N // 128) * 128
    cdt = _compute_dtype()
    dsize = 2 if cdt == jnp.bfloat16 else 4

    # NCHW -> (B, C, N) is a pure reshape; pad the spatial axis to a lane multiple.
    x_flat = x_nchw.reshape(B, C, N).astype(jnp.float32)
    if N_pad != N:
        x_flat = jnp.pad(x_flat, ((0, 0), (0, 0), (0, N_pad - N)))

    def pad_rows(w):
        return jnp.pad(w, ((0, P8 - P), (0, 0))) if P8 != P else w

    wt = params["wt"]
    if use_scale:
        wt = wt * (1.0 / (P ** 0.5))          # fold att / sqrt(planes) into t-proj
    wt = pad_rows(wt).astype(cdt)                                   # (P8, C)

    # Hoisted key/value projections: computed once per batch by XLA in the
    # compute dtype and fed as grid-invariant (B, P8, N_pad) slabs.
    wp = pad_rows(params["wp"]).astype(cdt)
    wg = pad_rows(params["wg"]).astype(cdt)
    x_c = x_flat.astype(cdt)
    p_slab = jnp.einsum("pc,bcn->bpn", wp, x_c,
                        preferred_element_type=jnp.float32).astype(cdt)
    g_slab = jnp.einsum("pc,bcn->bpn", wg, x_c,
                        preferred_element_type=jnp.float32).astype(cdt)

    # Eval-mode BatchNorm folded into the z-projection weight + per-channel shift.
    # TODO(synk): training-mode BatchNorm (batch statistics over B,H,W) is a
    # cross-batch reduction not implemented here; inference-mode BN is used.
    eps = 1e-5
    scale = params["bn_gamma"] / jnp.sqrt(params["bn_running_var"] + eps)   # (C,)
    shift = (params["bn_beta"] - params["bn_running_mean"] * scale)
    shift = shift.reshape(C, 1).astype(jnp.float32)                         # (C, 1)
    wz = params["wz"] * scale[:, None]
    if P8 != P:
        wz = jnp.pad(wz, ((0, 0), (0, P8 - P)))
    wz = wz.astype(cdt)                                                     # (C, P8)

    budget = _vmem_budget_bytes()
    TQ, est = _pick_query_tile(N_pad, C, P8, dsize, budget)
    grid = (B, N_pad // TQ)
    vmem_limit = int(min(max(32 << 20, int(1.5 * est)), 112 << 20))

    kernel = functools.partial(_spatial_nl_kernel, n_true=N, n_pad=N_pad,
                               compute_dtype=cdt)

    out_flat = pl.pallas_call(
        kernel,
        out_shape=jax.ShapeDtypeStruct((B, C, N_pad), jnp.float32),
        grid_spec=pltpu.PrefetchScalarGridSpec(
            num_scalar_prefetch=0,
            grid=grid,
            in_specs=[
                pl.BlockSpec((1, C, TQ), lambda b, q: (b, 0, q)),       # x query tile (t-proj + residual)
                pl.BlockSpec((1, P8, N_pad), lambda b, q: (b, 0, 0)),   # p slab (constant along q)
                pl.BlockSpec((1, P8, N_pad), lambda b, q: (b, 0, 0)),   # g slab (constant along q)
                pl.BlockSpec((P8, C), lambda b, q: (0, 0)),             # wt (scale folded)
                pl.BlockSpec((C, P8), lambda b, q: (0, 0)),             # wz (BN scale folded)
                pl.BlockSpec((C, 1), lambda b, q: (0, 0)),              # BN shift
            ],
            out_specs=pl.BlockSpec((1, C, TQ), lambda b, q: (b, 0, q)),
        ),
        compiler_params=pltpu.CompilerParams(
            dimension_semantics=("parallel", "parallel"),
            vmem_limit_bytes=vmem_limit,
        ),
    )(x_flat, p_slab, g_slab, wt, wz, shift)

    out_flat = out_flat[:, :, :N]
    return out_flat.reshape(B, C, H, W)


def spatial_nl_reference(x, params, *, use_scale=False):
    """Pure-JAX reference mirroring the PyTorch forward (eval-mode BN)."""
    B, C, H, W = x.shape
    N = H * W
    P = params["wt"].shape[0]
    xf = x.reshape(B, C, N).astype(jnp.float32)
    t = jnp.einsum("pc,bcn->bpn", params["wt"], xf)
    p = jnp.einsum("pc,bcn->bpn", params["wp"], xf)
    g = jnp.einsum("pc,bcn->bpn", params["wg"], xf)
    att = jnp.einsum("bpq,bpk->bqk", t, p)
    if use_scale:
        att = att / (P ** 0.5)
    att = jax.nn.softmax(att, axis=-1)
    y = jnp.einsum("bqk,bpk->bqp", att, g)
    z = jnp.einsum("cp,bqp->bcq", params["wz"], y)
    eps = 1e-5
    scale = params["bn_gamma"] / jnp.sqrt(params["bn_running_var"] + eps)
    shift = params["bn_beta"] - params["bn_running_mean"] * scale
    out = z * scale[None, :, None] + shift[None, :, None] + xf
    return out.reshape(B, C, H, W)


def init_params(key, inplanes, planes):
    ks = jax.random.split(key, 6)
    s_in = 1.0 / (inplanes ** 0.5)
    s_pl = 1.0 / (planes ** 0.5)
    return {
        "wt": jax.random.uniform(ks[0], (planes, inplanes), jnp.float32, -s_in, s_in),
        "wp": jax.random.uniform(ks[1], (planes, inplanes), jnp.float32, -s_in, s_in),
        "wg": jax.random.uniform(ks[2], (planes, inplanes), jnp.float32, -s_in, s_in),
        "wz": jax.random.uniform(ks[3], (inplanes, planes), jnp.float32, -s_pl, s_pl),
        "bn_gamma": jnp.ones((inplanes,), jnp.float32),
        "bn_beta": jnp.zeros((inplanes,), jnp.float32),
        "bn_running_mean": 0.1 * jax.random.normal(ks[4], (inplanes,), jnp.float32),
        "bn_running_var": jnp.abs(1.0 + 0.1 * jax.random.normal(ks[5], (inplanes,), jnp.float32)),
    }


if __name__ == "__main__":
    key = jax.random.PRNGKey(0)
    k_x, k_x2, k_p = jax.random.split(key, 3)

    B, C_in, planes = 2, 16, 8        # planes = inplanes // 2 (typical)
    params = init_params(k_p, C_in, planes)

    # Case 1: lane-aligned spatial size (16x16 -> N=256)
    x1 = jax.random.normal(k_x, (B, C_in, 16, 16), jnp.float32)
    # Case 2: non-aligned spatial size (12x12 -> N=144, padded + masked to 256)
    x2 = jax.random.normal(k_x2, (1, C_in, 12, 12), jnp.float32)

    for x in (x1, x2):
        for use_scale in (False, True):
            out = jax.block_until_ready(
                spatial_nl_forward(x, params, use_scale=use_scale))
            ref = spatial_nl_reference(x, params, use_scale=use_scale)
            assert out.shape == x.shape
            # bf16 matmul operands on TPU -> slightly looser tolerance
            assert jnp.allclose(out, ref, rtol=3e-2, atol=3e-2), \
                f"mismatch vs JAX reference (shape={x.shape}, use_scale={use_scale})"

    print("KERNEL_OK")
</pallas_src>

<mosaic_0001>
module attributes {stable_mosaic.version = 11 : i64} {
  func.func @_spatial_nl_kernel(%arg0: i32, %arg1: i32, %arg2: memref<1x16x256xf32, #tpu.memory_space<vmem>>, %arg3: memref<1x8x256xf32, #tpu.memory_space<vmem>>, %arg4: memref<1x8x256xf32, #tpu.memory_space<vmem>>, %arg5: memref<8x16xf32, #tpu.memory_space<vmem>>, %arg6: memref<16x8xf32, #tpu.memory_space<vmem>>, %arg7: memref<16x1xf32, #tpu.memory_space<vmem>>, %arg8: memref<1x16x256xf32, #tpu.memory_space<vmem>>) attributes {dimension_semantics = [#tpu.dimension_semantics<parallel>, #tpu.dimension_semantics<parallel>], iteration_bounds = array<i64: 2, 1>, scalar_prefetch = 0 : i64, scratch_operands = 0 : i64, tpu.core_type = #tpu.core_type<tc>, window_params = [{transform_indices = @transform_0, window_bounds = array<i64: 1, 16, 256>}, {transform_indices = @transform_1, window_bounds = array<i64: 1, 8, 256>}, {transform_indices = @transform_2, window_bounds = array<i64: 1, 8, 256>}, {pipeline_mode = #tpu.pipeline_mode<synchronous>, transform_indices = @transform_3, window_bounds = array<i64: 8, 16>}, {pipeline_mode = #tpu.pipeline_mode<synchronous>, transform_indices = @transform_4, window_bounds = array<i64: 16, 8>}, {pipeline_mode = #tpu.pipeline_mode<synchronous>, transform_indices = @transform_5, window_bounds = array<i64: 16, 1>}, {transform_indices = @transform_6, window_bounds = array<i64: 1, 16, 256>}]} {
    %c0 = arith.constant 0 : index
    %c0_0 = arith.constant 0 : index
    %c0_1 = arith.constant 0 : index
    %0 = vector.load %arg2[%c0, %c0_0, %c0_1] : memref<1x16x256xf32, #tpu.memory_space<vmem>>, vector<1x16x256xf32>
    %1 = vector.shape_cast %0 : vector<1x16x256xf32> to vector<16x256xf32>
    %c0_2 = arith.constant 0 : index
    %c0_3 = arith.constant 0 : index
    %2 = vector.load %arg5[%c0_2, %c0_3] : memref<8x16xf32, #tpu.memory_space<vmem>>, vector<8x16xf32>
    %cst = arith.constant dense<0.000000e+00> : vector<8x256xf32>
    %3 = tpu.matmul %2, %1, %cst {dimension_numbers = #tpu.dot_dimension_numbers<[1], [0], [0], [1], [0, 0, 1, 1], [], []>} : vector<8x16xf32>, vector<16x256xf32>, vector<8x256xf32> -> vector<8x256xf32>
    %4 = tpu.transpose %3, [1, 0] : vector<8x256xf32> -> vector<256x8xf32>
    %c0_4 = arith.constant 0 : index
    %c0_5 = arith.constant 0 : index
    %c0_6 = arith.constant 0 : index
    %5 = vector.load %arg3[%c0_4, %c0_5, %c0_6] : memref<1x8x256xf32, #tpu.memory_space<vmem>>, vector<1x8x256xf32>
    %6 = vector.shape_cast %5 : vector<1x8x256xf32> to vector<8x256xf32>
    %c0_7 = arith.constant 0 : index
    %c0_8 = arith.constant 0 : index
    %c0_9 = arith.constant 0 : index
    %7 = vector.load %arg4[%c0_7, %c0_8, %c0_9] : memref<1x8x256xf32, #tpu.memory_space<vmem>>, vector<1x8x256xf32>
    %8 = vector.shape_cast %7 : vector<1x8x256xf32> to vector<8x256xf32>
    %cst_10 = arith.constant dense<0.000000e+00> : vector<256x256xf32>
    %9 = tpu.matmul %4, %6, %cst_10 {dimension_numbers = #tpu.dot_dimension_numbers<[1], [0], [0], [1], [0, 0, 1, 1], [], []>} : vector<256x8xf32>, vector<8x256xf32>, vector<256x256xf32> -> vector<256x256xf32>
    %cst_11 = arith.constant dense<0xFF800000> : vector<256xf32>
    %10 = vector.multi_reduction <maximumf>, %9, %cst_11 [1] : vector<256x256xf32> to vector<256xf32>
    %11 = vector.shape_cast %10 : vector<256xf32> to vector<256x1xf32>
    %12 = vector.broadcast %11 : vector<256x1xf32> to vector<256x256xf32>
    %13 = arith.subf %9, %12 : vector<256x256xf32>
    %14 = math.exp %13 : vector<256x256xf32>
    %cst_12 = arith.constant dense<0.000000e+00> : vector<256xf32>
    %15 = vector.multi_reduction <add>, %14, %cst_12 [1] : vector<256x256xf32> to vector<256xf32>
    %16 = vector.shape_cast %15 : vector<256xf32> to vector<256x1xf32>
    %cst_13 = arith.constant dense<0.000000e+00> : vector<256x8xf32>
    %17 = tpu.matmul %14, %8, %cst_13 {dimension_numbers = #tpu.dot_dimension_numbers<[1], [1], [0], [0], [0, 0, 1, 0], [], []>} : vector<256x256xf32>, vector<8x256xf32>, vector<256x8xf32> -> vector<256x8xf32>
    %18 = vector.broadcast %16 : vector<256x1xf32> to vector<256x8xf32>
    %19 = arith.divf %17, %18 : vector<256x8xf32>
    %c0_14 = arith.constant 0 : index
    %c0_15 = arith.constant 0 : index
    %20 = vector.load %arg6[%c0_14, %c0_15] : memref<16x8xf32, #tpu.memory_space<vmem>>, vector<16x8xf32>
    %cst_16 = arith.constant dense<0.000000e+00> : vector<16x256xf32>
    %21 = tpu.matmul %20, %19, %cst_16 {dimension_numbers = #tpu.dot_dimension_numbers<[1], [1], [0], [0], [0, 0, 1, 0], [], []>} : vector<16x8xf32>, vector<256x8xf32>, vector<16x256xf32> -> vector<16x256xf32>
    %c0_17 = arith.constant 0 : index
    %c0_18 = arith.constant 0 : index
    %22 = vector.load %arg7[%c0_17, %c0_18] : memref<16x1xf32, #tpu.memory_space<vmem>>, vector<16x1xf32>
    %23 = vector.broadcast %22 : vector<16x1xf32> to vector<16x256xf32>
    %24 = arith.addf %21, %23 : vector<16x256xf32>
    %25 = arith.addf %24, %1 : vector<16x256xf32>
    %c0_19 = arith.constant 0 : index
    %c0_20 = arith.constant 0 : index
    %c0_21 = arith.constant 0 : index
    %26 = vector.load %arg8[%c0_19, %c0_20, %c0_21] : memref<1x16x256xf32, #tpu.memory_space<vmem>>, vector<1x16x256xf32>
    %27 = vector.shape_cast %26 : vector<1x16x256xf32> to vector<16x256xf32>
    %28 = vector.shape_cast %25 : vector<16x256xf32> to vector<1x16x256xf32>
    tpu.vector_store %arg8[%c0_19, %c0_20, %c0_21], %28 {strides = array<i32>} : memref<1x16x256xf32, #tpu.memory_space<vmem>>, vector<1x16x256xf32>,
    return
  }
  func.func @transform_0(%arg0: i32, %arg1: i32) -> (i32, i32, i32) {
    %c0_i32 = arith.constant 0 : i32
    %c0_i32_0 = arith.constant 0 : i32
    return %arg0, %c0_i32, %arg1 : i32, i32, i32
  }
  func.func @transform_1(%arg0: i32, %arg1: i32) -> (i32, i32, i32) {
    %c0_i32 = arith.constant 0 : i32
    %c0_i32_0 = arith.constant 0 : i32
    %c0_i32_1 = arith.constant 0 : i32
    return %arg0, %c0_i32, %c0_i32_0 : i32, i32, i32
  }
  func.func @transform_2(%arg0: i32, %arg1: i32) -> (i32, i32, i32) {
    %c0_i32 = arith.constant 0 : i32
    %c0_i32_0 = arith.constant 0 : i32
    %c0_i32_1 = arith.constant 0 : i32
    return %arg0, %c0_i32, %c0_i32_0 : i32, i32, i32
  }
  func.func @transform_3(%arg0: i32, %arg1: i32) -> (i32, i32) {
    %c0_i32 = arith.constant 0 : i32
    %c0_i32_0 = arith.constant 0 : i32
    %c0_i32_1 = arith.constant 0 : i32
    return %c0_i32, %c0_i32_0 : i32, i32
  }
  func.func @transform_4(%arg0: i32, %arg1: i32) -> (i32, i32) {
    %c0_i32 = arith.constant 0 : i32
    %c0_i32_0 = arith.constant 0 : i32
    %c0_i32_1 = arith.constant 0 : i32
    return %c0_i32, %c0_i32_0 : i32, i32
  }
  func.func @transform_5(%arg0: i32, %arg1: i32) -> (i32, i32) {
    %c0_i32 = arith.constant 0 : i32
    %c0_i32_0 = arith.constant 0 : i32
    %c0_i32_1 = arith.constant 0 : i32
    return %c0_i32, %c0_i32_0 : i32, i32
  }
  func.func @transform_6(%arg0: i32, %arg1: i32) -> (i32, i32, i32) {
    %c0_i32 = arith.constant 0 : i32
    %c0_i32_0 = arith.constant 0 : i32
    return %arg0, %c0_i32, %arg1 : i32, i32, i32
  }
}

</mosaic_0001>

<bundles_post_ra>
// kernel: tpu_custom_call.1
= control target key start
LH: loop header
LB: loop body
LE: loop exit
PB: predicated region body
PF: predicated region fallthrough
CT: control target
= control target key end

     0   :  { %s3280_s0 = inlined_call_operand.hbm [shape: f32[2,16,256], index: 0, kind: input, shape index: {}]   ;;  %s3281_s1 = inlined_call_operand.vmem [shape: f32[2,8,256], index: 1, kind: input, shape index: {}]   ;;  %s3282_s2 = inlined_call_operand.hbm [shape: f32[2,8,256], index: 2, kind: input, shape index: {}]   ;;  %s3283_s3 = inlined_call_operand.vmem [shape: f32[8,16], index: 3, kind: input, shape index: {}]   ;;  %s3284_s4 = inlined_call_operand.vmem [shape: f32[16,8], index: 4, kind: input, shape index: {}]   ;;  %s3285_s5 = inlined_call_operand.vmem [shape: f32[16,1], index: 5, kind: input, shape index: {}]   ;;  %s3286_s6 = inlined_call_operand.hbm [shape: f32[2,16,256], index: 6, kind: output, shape index: {}]  }
   0x1   :  { %3303 = sst [smem:[#allocation25_spill]] %s3280_s0 }
   0x2   :  { %11 = vsyncpa [#allocation3], 0 }
   0x3   :  { %13 = vsyncpa [#allocation3 + $0x1], 0 }
   0x4   :  { %14 = vsyncpa [#allocation6], 0 }
   0x5   :  { %16 = vsyncpa [#allocation6 + $0x1], 0 }
   0x6   :  { %17 = vsyncpa [#allocation4], 0 }
   0x7   :  { %19 = vsyncpa [#allocation4 + $0x1], 0  ;;  %s2505_s21 = smov 0   ;;  %s2507_s22 = smov 0  }
   0x8   :  { %s2509_s23 = smov 0   ;;  %s2511_s24 = smov 0  }
   0x9   :  { %s2513_s25 = smov 0   ;;  %s2515_s26 = smov 0  }
   0xa LB: > { %s1862_s27 = sadd.s32 4294967295, %s2459_s26   ;;  %s1863_s28 = sadd.s32 4294967294, %s2459_s26   ;;  %s2459_s26 = sphi %s2515_s26, %s25_s26   ;;  %s2455_s25 = sphi %s2513_s25, %s3351_s25   ;;  %s2451_s24 = sphi %s2511_s24, %s3350_s24   ;;  %s2447_s23 = sphi %s2509_s23, %s3349_s23   ;;  %s2443_s22 = sphi %s2507_s22, %s3348_s22   ;;  %s2439_s21 = sphi %s2505_s21, %s3347_s21  }
   0xb   : > { %s37_s29 = sadd.s32 1, %s2455_s25  ;;  %s46_s30 = sadd.s32 1, %s2447_s23 }
   0xc   : > { %p39_p0 = scmp.ge.s32.totalorder %s37_s29, 2  ;;  %p53_p1 = scmp.ne.s32.totalorder %s2447_s23, %s2443_s22 }
   0xd   : > { %p54_p2 = scmp.eq.s32.totalorder %s2459_s26, 0  ;;  %p59_p3 = scmp.ne.s32.totalorder %s2443_s22, %s2439_s21 }
   0xe   : > { %s3353_s29 = smov (%p39_p0, %s37_s29), 0  ;;  %p60_p5 = scmp.eq.s32.totalorder %s1862_s27, 0 }
   0xf   : > { %3304 = sst [smem:[#allocation11_spill]] %s3353_s29  ;;  %p2546_p4 = por %p54_p2, %p53_p1 }
  0x10   : > { %s41_s8 = ssub.s32 %s2455_s25, %s3353_s29  ;;  %p200_p6 = scmp.eq.s32.totalorder %s1862_s27, 1 }
  0x11   : > { %p44_p7 = scmp.eq.s32.totalorder %s41_s8, 0  ;;  %p2552_p8 = por %p60_p5, %p59_p3 }
  0x12   : > { %p2556_p9 = por %p200_p6, %p53_p1  ;;  %p206_p10 = scmp.eq.s32.totalorder %s1863_s28, 1 }
  0x13   : > { %s3306_s9 = scalar_select %p2552_p8, 1, 0 }
  0x14   : > { %s3307_s10 = scalar_select %p2556_p9, 1, 0 }
  0x15   : > { %s2561_s11 = scalar_select %p44_p7, %s2447_s23, %s46_s30  }
  0x16   : > { %p2563_p11 = por %p206_p10, %p59_p3  ;;  %p2059_p13 = scmp.lt.s32.totalorder %s2459_s26, 2 }
  0x17   : > { %s2570_s13 = sand.u32 1, %s2447_s23   ;;  %s1950_s15 = sshll.u32 %s2455_s25, 9 }
  0x18   : > { %s3308_s12 = scalar_select %p2563_p11, 1, 0 }
  0x19   : > { %s1866_s14 = sshll.u32 %s2570_s13, 5  ;;  %s3309_s0 = sld [smem:[#allocation25_spill]] }
  0x1a   : > { %s239_s19 = scalar_lea.vmem [#allocation2], %s1866_s14  ;;  %p2583_p0 = pnand %p2059_p13, %p2546_p4 }
  0x1b   : > { %s248_s20 = sshll.u32 %s239_s19, 4  ;;  %s236_s28 = scalar_lea.sflag [#allocation3], %s2570_s13  ;;  %s2579_s20 = int_to_ptr.vmem [resolvable:$true] %s248_s20 }
  0x1c   : > { %p2315_p3 = pneg %p2583_p0 }
  0x1f   : > { %s2577_s18 = scalar_lea.hbm %s3309_s0, %s1950_s15  ;;  %s2318_s7 = scalar_lea.hbm %s3309_s0, 1024 }
  0x20   : > { %s2313_s30 = scalar_lea.hbm %s2577_s18, 512  ;;  %p2319_p4 = scmp.lt.u32.totalorder %s2577_s18, %s3309_s0 }
  0x21   : > { %p2314_p2 = scmp.ne.s32.totalorder %s2577_s18, %s2313_s30  ;;  %p2320_p7 = scmp.lt.u32.totalorder %s2318_s7, %s2313_s30 }
  0x22   : > { %p2322_p13 = scmp.lt.u32.totalorder %s2313_s30, %s2577_s18 }
  0x23   : > { %p2316_p5 = pnand %p2315_p3, %p2314_p2  ;;  %p2321_p10 = por %p2320_p7, %p2319_p4 }
  0x25   : > { %p2317_p6 = pneg %p2316_p5  ;;  %p2323_p12 = por %p2322_p13, %p2321_p10 }
  0x27   : > { %p2324_p1 = pnand %p2323_p12, %p2317_p6 }
  0x29   : > { %2327 = shalt.err (!%p2324_p1)
}
  0x2a   : > { %s2328_s17 = scalar_lea.vmem %s2579_s20, 512  ;;  %s2461_s19 = smov [#allocation2]  }
  0x2b   : > { %p2329_p2 = scmp.ne.s32.totalorder %s2579_s20, %s2328_s17  ;;  %s2333_s8 = sshll.u32 %s2461_s19, 4  ;;  %s2334_s8 = int_to_ptr.vmem [resolvable:$false] %s2333_s8 }
  0x2c   : > { %s2335_s14 = scalar_lea.vmem %s2334_s8, 1024  ;;  %p2336_p9 = scmp.lt.s32.totalorder %s2579_s20, %s2334_s8 }
  0x2d   : > { %p2331_p5 = pnand %p2329_p2, %p2315_p3  ;;  %p2337_p4 = scmp.lt.s32.totalorder %s2335_s14, %s2328_s17 }
  0x2f   : > { %p2332_p11 = pneg %p2331_p5  ;;  %p2338_p7 = por %p2337_p4, %p2336_p9 }
  0x31   : > { %p2339_p10 = pnand %p2338_p7, %p2332_p11 }
  0x33   : > { %2342 = shalt.err (!%p2339_p10)
}
  0x34   : > { %s2462_s30 = smov 256   ;;  %s2463_s7 = smov 16  }
  0x35   : > { %2051 = dma.hbm_to_vmem [thread:$0]  (!%p2583_p0), %s2577_s18, 512, %s2579_s20, %s236_s28, %s2462_s30, %s2462_s30, %s2463_s7  }
  0x36   : > { %p283_p12 = scmp.lt.s32.totalorder %s2459_s26, 3  ;;  %s1869_s15 = sshll.u32 %s2570_s13, 4 }
  0x37   : > { %s1951_s16 = sshll.u32 %s2455_s25, 8  ;;  %p3311_p9 = scmp.ge.s32.totalorder %s2459_s26, 1 }
  0x38   : > { %s2628_s14 = scalar_lea.hbm %s3282_s2, %s1951_s16  ;;  %s270_s0 = scalar_lea.vmem [#allocation5], %s1869_s15 }
  0x39   : > { %p2621_p11 = pnand %p3311_p9, %p283_p12  ;;  %s278_s29 = sshll.u32 %s270_s0, 4  ;;  %s279_s29 = int_to_ptr.vmem [resolvable:$true] %s278_s29 }
  0x3a   : > { %s267_s18 = scalar_lea.sflag [#allocation6], %s2570_s13  ;;  %s2343_s20 = scalar_lea.hbm %s2628_s14, 256 }
  0x3b   : > { %s3312_s17 = scalar_select %p2621_p11, 1, 0 }
  0x3c   : > { %p2344_p1 = scmp.ne.s32.totalorder %s2628_s14, %s2343_s20  ;;  %s2348_s7 = scalar_lea.hbm %s3282_s2, 512 }
  0x3d   : > { %p2349_p2 = scmp.lt.u32.totalorder %s2628_s14, %s3282_s2  ;;  %p2350_p5 = scmp.lt.u32.totalorder %s2348_s7, %s2343_s20 }
  0x3e   : > { %p2346_p6 = pnand %p2344_p1, %p2315_p3  ;;  %p2352_p7 = scmp.lt.u32.totalorder %s2343_s20, %s2628_s14 }
  0x3f   : > { %p2351_p4 = por %p2350_p5, %p2349_p2 }
  0x40   : > { %p2347_p13 = pneg %p2346_p6 }
  0x41   : > { %p2353_p10 = por %p2352_p7, %p2351_p4 }
  0x43   : > { %p2354_p12 = pnand %p2353_p10, %p2347_p13 }
  0x45   : > { %2357 = shalt.err (!%p2354_p12)
}
  0x46   : > { %s2358_s0 = scalar_lea.vmem %s279_s29, 256  ;;  %s2464_s13 = smov [#allocation5]  }
  0x47   : > { %p2359_p9 = scmp.ne.s32.totalorder %s279_s29, %s2358_s0  ;;  %s2363_s15 = sshll.u32 %s2464_s13, 4  ;;  %s2364_s15 = int_to_ptr.vmem [resolvable:$false] %s2363_s15 }
  0x48   : > { %s2365_s8 = scalar_lea.vmem %s2364_s15, 512  ;;  %p2366_p8 = scmp.lt.s32.totalorder %s279_s29, %s2364_s15 }
  0x49   : > { %p2361_p1 = pnand %p2359_p9, %p2315_p3  ;;  %p2367_p11 = scmp.lt.s32.totalorder %s2365_s8, %s2358_s0 }
  0x4b   : > { %p2362_p6 = pneg %p2361_p1  ;;  %p2368_p2 = por %p2367_p11, %p2366_p8 }
  0x4d   : > { %p2369_p5 = pnand %p2368_p2, %p2362_p6 }
  0x4f   : > { %2372 = shalt.err (!%p2369_p5)
}
  0x50   : > { %2054 = dma.hbm_to_vmem [thread:$0]  (!%p2583_p0), %s2628_s14, 256, %s279_s29, %s267_s18  }
  0x51   : > { %p3313_p13 = scmp.ne.s32.totalorder %s3312_s17, 0 }
  0x53   : > { %287 = sbr.rel (%p3313_p13) target bundleno = 1403 (0x57b), region = 44 }
  0x5a   : > { %s2653_s20 = sand.u32 1, %s2443_s22   ;;  %p3314_p8 = scmp.ne.s32.totalorder %s3306_s9, 0 }
  0x5b   : > { %s1873_s28 = sshll.u32 %s2653_s20, 5  ;;  %s290_s30 = scalar_lea.sflag [#allocation3], %s2653_s20 }
  0x5c   : > { %s2659_s7 = scalar_lea.vmem [#allocation2], %s1873_s28 }
  0x5d   : > { %2426 = dma.done.wait (%p3314_p8), %s290_s30, 512  }
  0x5e   : > { %2428 = vsyncadd (%p3314_p8), %s290_s30, 4294966784  ;;  %s1874_s29 = sshll.u32 %s2653_s20, 4  ;;  %s299_s27 = scalar_lea.sflag [#allocation6], %s2653_s20 }
  0x5f   : > { %s2667_s17 = scalar_lea.vmem [#allocation5], %s1874_s29 }
  0x60   : > { %2430 = dma.done.wait (%p3314_p8), %s299_s27, 256  }
  0x61   : > { %2432 = vsyncadd (%p3314_p8), %s299_s27, 4294967040  ;;  %v2465_v0 = vmov 0.0   ;;  %v349_v1 = vld [vmem:[%s2659_s7 + $0x8] sm:$0xff]  ;;  %v351_v2 = vld [vmem:[%s2659_s7 + $0x18] sm:$0xff]  ;;  %vm353_vm0 = vcmask 130048   ;;  %p342_p0 = scmp.lt.s32.totalorder %s2451_s24, 1 }
  0x62   : > { %421 = vmatprep.mubr.f32.mxu0 %v2465_v0  ;;  %657 = vmatprep.mubr.f32.mxu1 %v2465_v0  ;;  %v348_v3 = vld [vmem:[%s2659_s7] sm:$0xff]  ;;  %v1990_v4 = vpack.c.bf16 %v351_v2, %v349_v1  ;;  %v350_v5 = vld [vmem:[%s2659_s7 + $0x10] sm:$0xff]  ;;  %vm496_vm1 = vcmask 64512   ;;  %s1953_s19 = sshll.u32 %s2451_s24, 9  ;;  %p3343_p11 = scmp.ne.s32.totalorder %s3307_s10, 0 }
  0x63   : > { %v1992_v6 = vpack.c.bf16 %v350_v5, %v348_v3  ;;  %v352_v7 = vld [vmem:[%s3283_s3] sm:$0xff]  ;;  %s343_s18 = scalar_select %p342_p0, %s2451_s24, 1  ;;  %vm3134_vm2 = vmpackc.low %vm496_vm1, %vm496_vm1 }
  0x64   : > { %1991 = vmatprep.subr.bf16.mxu0 %v1990_v4  ;;  %v495_v4 = vld [vmem:[%s2667_s17 + $0x8] sm:$0xff]  ;;  %v494_v5 = vld [vmem:[%s2667_s17] sm:$0xff]  ;;  %s1725_s24 = scalar_lea.sflag [#allocation4], %s2653_s20  ;;  %s2467_s8 = smov [#allocation7]  }
  0x65   : > { %1993 = vmatpush1.bf16.msra.mxu0 %v1992_v6  ;;  %s1952_s16 = sshll.u32 %s343_s18, 4  ;;  %s340_s18 = scalar_lea.vmem [#allocation7], %s1873_s28 }
  0x66   : > { %s346_s13 = scalar_lea.vmem %s3281_s1, %s1952_s16  ;;  %1234 = vmatprep.subr.mxu0 %v495_v4  ;;  %s1740_s16 = sshll.u32 %s340_s18, 4  ;;  %s3224_s16 = int_to_ptr.vmem [resolvable:$true] %s1740_s16 }
  0x67   : > { %v493_v8 = vld [vmem:[%s346_s13 + $0x8] sm:$0xff]  ;;  %v492_v9 = vld [vmem:[%s346_s13] sm:$0xff]  ;;  %s3230_s13 = scalar_lea.hbm %s3286_s6, %s1953_s19  ;;  %s2373_s15 = scalar_lea.vmem %s3224_s16, 512 }
  0x68   : > { %1878 = vmatmul.mubr.msk.f32.vlgmr.msra.gmra.mrb[0].mxu0 %vm353_vm0, %v352_v7  ;;  %593 = vmatprep.subr.mxu1 %v493_v8  ;;  %p2374_p3 = scmp.ne.s32.totalorder %s3224_s16, %s2373_s15  ;;  %s2377_s30 = sshll.u32 %s2467_s8, 4  ;;  %s2378_s30 = int_to_ptr.vmem [resolvable:$false] %s2377_s30 }
  0x69   : > { %594 = vmatpush1.msra.mxu1 %v492_v9  ;;  %s2379_s29 = scalar_lea.vmem %s2378_s30, 1024  ;;  %p2380_p10 = scmp.lt.s32.totalorder %s3224_s16, %s2378_s30 }
  0x6a   : > { %p2375_p4 = pnand %p2374_p3, %p3343_p11  ;;  %p2381_p12 = scmp.lt.s32.totalorder %s2379_s29, %s2373_s15 }
  0x6c   : > { %p2376_p7 = pneg %p2375_p4  ;;  %p2382_p9 = por %p2381_p12, %p2380_p10 }
  0x6e   : > { %1235 = vmatpush1.xpose.msra.mxu0 %v494_v5  ;;  %p2383_p1 = pnand %p2382_p9, %p2376_p7 }
 0x13b   : > { %v423_v10 = vpop.f32.mrb[0].mxu0 }
 0x13c   : > { %428 = vxpose.xlu0.b32.start.end [1/1] (short) %v423_v10, 128  ;;  %v425_v11 = vpop.f32.mrb[1].mxu0 }
 0x179   : > { %460 = vxpose.xlu0.b32.start.end [1/1] (short) %v425_v11, 128 }
 0x1bc   : > { %v444_v12 = vpop.trf.xlu0 }
 0x1bd   : > { %1879 = vmatmul.mubr.msk.f32.vlgmr.msra.gmra.mrb[0].mxu1 %vm496_vm1, %v444_v12 }
 0x1be   : > { %663 = vmatprep.mubr.f32.mxu1 %v2465_v0 }
 0x1c0   : > { %v445_v13 = vpop.trf.xlu0 }
 0x1c1   : > { %1880 = vmatmul.mubr.msk.f32.gmra.mrb[2].mxu1 %vm496_vm1, %v445_v13 }
 0x1c2   : > { %669 = vmatprep.mubr.f32.mxu1 %v2465_v0 }
 0x1c4   : > { %v446_v14 = vpop.trf.xlu0 }
 0x1c5   : > { %1881 = vmatmul.mubr.msk.f32.gmra.mrb[4].mxu1 %vm496_vm1, %v446_v14 }
 0x1c6   : > { %675 = vmatprep.mubr.f32.mxu1 %v2465_v0 }
 0x1c8   : > { %v447_v15 = vpop.trf.xlu0 }
 0x1c9   : > { %1882 = vmatmul.mubr.msk.f32.gmra.mrb[6].mxu1 %vm496_vm1, %v447_v15 }
 0x1ca   : > { %681 = vmatprep.mubr.f32.mxu1 %v2465_v0 }
 0x1cc   : > { %v448_v16 = vpop.trf.xlu0 }
 0x1cd   : > { %1883 = vmatmul.mubr.msk.f32.gmra.mrb[8].mxu1 %vm496_vm1, %v448_v16 }
 0x1ce   : > { %687 = vmatprep.mubr.f32.mxu1 %v2465_v0 }
 0x1d0   : > { %v449_v17 = vpop.trf.xlu0 }
 0x1d1   : > { %1884 = vmatmul.mubr.msk.f32.gmra.mrb[10].mxu1 %vm496_vm1, %v449_v17 }
 0x1d2   : > { %693 = vmatprep.mubr.f32.mxu1 %v2465_v0 }
 0x1d4   : > { %v450_v18 = vpop.trf.xlu0 }
 0x1d5   : > { %1885 = vmatmul.mubr.msk.f32.gmra.mrb[12].mxu1 %vm496_vm1, %v450_v18 }
 0x1d6   : > { %699 = vmatprep.mubr.f32.mxu1 %v2465_v0 }
 0x1d8   : > { %v451_v19 = vpop.trf.xlu0 }
 0x1d9   : > { %1886 = vmatmul.mubr.msk.f32.gmra.mrb[14].mxu1 %vm496_vm1, %v451_v19 }
 0x1da   : > { %705 = vmatprep.mubr.f32.mxu1 %v2465_v0 }
 0x1dc   : > { %v452_v20 = vpop.trf.xlu0 }
 0x1dd   : > { %1887 = vmatmul.mubr.msk.f32.gmra.mrb[16].mxu1 %vm496_vm1, %v452_v20 }
 0x1de   : > { %711 = vmatprep.mubr.f32.mxu1 %v2465_v0 }
 0x1e0   : > { %v453_v21 = vpop.trf.xlu0 }
 0x1e1   : > { %1888 = vmatmul.mubr.msk.f32.gmra.mrb[18].mxu1 %vm496_vm1, %v453_v21 }
 0x1e2   : > { %717 = vmatprep.mubr.f32.mxu1 %v2465_v0 }
 0x1e4   : > { %v454_v22 = vpop.trf.xlu0 }
 0x1e5   : > { %1889 = vmatmul.mubr.msk.f32.gmra.mrb[20].mxu1 %vm496_vm1, %v454_v22 }
 0x1e6   : > { %723 = vmatprep.mubr.f32.mxu1 %v2465_v0 }
 0x1e8   : > { %v455_v23 = vpop.trf.xlu0 }
 0x1e9   : > { %1890 = vmatmul.mubr.msk.f32.gmra.mrb[22].mxu1 %vm496_vm1, %v455_v23 }
 0x1ea   : > { %729 = vmatprep.mubr.f32.mxu1 %v2465_v0 }
 0x1ec   : > { %v456_v24 = vpop.trf.xlu0 }
 0x1ed   : > { %1891 = vmatmul.mubr.msk.f32.gmra.mrb[24].mxu1 %vm496_vm1, %v456_v24 }
 0x1ee   : > { %735 = vmatprep.mubr.f32.mxu1 %v2465_v0 }
 0x1f0   : > { %v457_v25 = vpop.trf.xlu0 }
 0x1f1   : > { %1892 = vmatmul.mubr.msk.f32.gmra.mrb[26].mxu1 %vm496_vm1, %v457_v25 }
 0x1f2   : > { %741 = vmatprep.mubr.f32.mxu1 %v2465_v0 }
 0x1f4   : > { %v458_v26 = vpop.trf.xlu0 }
 0x1f5   : > { %1893 = vmatmul.mubr.msk.f32.gmra.mrb[28].mxu1 %vm496_vm1, %v458_v26 }
 0x1f6   : > { %747 = vmatprep.mubr.f32.mxu1 %v2465_v0 }
 0x1f8   : > { %v459_v27 = vpop.trf.xlu0 }
 0x1f9   : > { %1894 = vmatmul.mubr.msk.f32.gmra.mrb[30].mxu1 %vm496_vm1, %v459_v27 }
 0x1fa   : > { %753 = vmatprep.mubr.f32.mxu1 %v2465_v0 }
 0x1fc   : > { %v476_v28 = vpop.trf.xlu0 }
 0x1fd   : > { %1895 = vmatmul.mubr.msk.f32.gmra.mrb[32].mxu1 %vm496_vm1, %v476_v28 }
 0x1fe   : > { %759 = vmatprep.mubr.f32.mxu1 %v2465_v0 }
 0x200   : > { %v477_v29 = vpop.trf.xlu0 }
 0x201   : > { %1896 = vmatmul.mubr.msk.f32.gmra.mrb[34].mxu1 %vm496_vm1, %v477_v29 }
 0x202   : > { %765 = vmatprep.mubr.f32.mxu1 %v2465_v0 }
 0x204   : > { %v478_v30 = vpop.trf.xlu0 }
 0x205   : > { %1897 = vmatmul.mubr.msk.f32.gmra.mrb[36].mxu1 %vm496_vm1, %v478_v30 }
 0x206   : > { %771 = vmatprep.mubr.f32.mxu1 %v2465_v0 }
 0x208   : > { %v479_v31 = vpop.trf.xlu0 }
 0x209   : > { %1898 = vmatmul.mubr.msk.f32.gmra.mrb[38].mxu1 %vm496_vm1, %v479_v31 }
 0x20a   : > { %777 = vmatprep.mubr.f32.mxu1 %v2465_v0 }
 0x20c   : > { %v480_v32 = vpop.trf.xlu0 }
 0x20d   : > { %1899 = vmatmul.mubr.msk.f32.gmra.mrb[40].mxu1 %vm496_vm1, %v480_v32 }
 0x20e   : > { %783 = vmatprep.mubr.f32.mxu1 %v2465_v0 }
 0x210   : > { %v481_v33 = vpop.trf.xlu0 }
 0x211   : > { %1900 = vmatmul.mubr.msk.f32.gmra.mrb[42].mxu1 %vm496_vm1, %v481_v33 }
 0x212   : > { %789 = vmatprep.mubr.f32.mxu1 %v2465_v0 }
 0x214   : > { %v482_v34 = vpop.trf.xlu0 }
 0x215   : > { %1901 = vmatmul.mubr.msk.f32.gmra.mrb[44].mxu1 %vm496_vm1, %v482_v34 }
 0x216   : > { %795 = vmatprep.mubr.f32.mxu1 %v2465_v0 }
 0x218   : > { %v483_v35 = vpop.trf.xlu0 }
 0x219   : > { %1902 = vmatmul.mubr.msk.f32.gmra.mrb[46].mxu1 %vm496_vm1, %v483_v35 }
 0x21a   : > { %801 = vmatprep.mubr.f32.mxu1 %v2465_v0 }
 0x21c   : > { %v484_v36 = vpop.trf.xlu0 }
 0x21d   : > { %1903 = vmatmul.mubr.msk.f32.gmra.mrb[48].mxu1 %vm496_vm1, %v484_v36 }
 0x21e   : > { %807 = vmatprep.mubr.f32.mxu1 %v2465_v0 }
 0x220   : > { %v485_v37 = vpop.trf.xlu0 }
 0x221   : > { %1904 = vmatmul.mubr.msk.f32.gmra.mrb[50].mxu1 %vm496_vm1, %v485_v37 }
 0x222   : > { %813 = vmatprep.mubr.f32.mxu1 %v2465_v0 }
 0x224   : > { %v486_v38 = vpop.trf.xlu0 }
 0x225   : > { %1905 = vmatmul.mubr.msk.f32.gmra.mrb[52].mxu1 %vm496_vm1, %v486_v38 }
 0x226   : > { %819 = vmatprep.mubr.f32.mxu1 %v2465_v0 }
 0x228   : > { %v487_v39 = vpop.trf.xlu0 }
 0x229   : > { %1906 = vmatmul.mubr.msk.f32.gmra.mrb[54].mxu1 %vm496_vm1, %v487_v39 }
 0x22a   : > { %825 = vmatprep.mubr.f32.mxu1 %v2465_v0 }
 0x22c   : > { %v488_v40 = vpop.trf.xlu0 }
 0x22d   : > { %1907 = vmatmul.mubr.msk.f32.gmra.mrb[56].mxu1 %vm496_vm1, %v488_v40 }
 0x22e   : > { %831 = vmatprep.mubr.f32.mxu1 %v2465_v0 }
 0x230   : > { %v489_v41 = vpop.trf.xlu0 }
 0x231   : > { %1908 = vmatmul.mubr.msk.f32.gmra.mrb[58].mxu1 %vm496_vm1, %v489_v41 }
 0x232   : > { %837 = vmatprep.mubr.f32.mxu1 %v2465_v0 }
 0x234   : > { %v490_v42 = vpop.trf.xlu0 }
 0x235   : > { %1909 = vmatmul.mubr.msk.f32.gmra.mrb[60].mxu1 %vm496_vm1, %v490_v42 }
 0x236   : > { %843 = vmatprep.mubr.f32.mxu1 %v2465_v0 }
 0x238   : > { %v491_v43 = vpop.trf.xlu0 }
 0x239   : > { %1910 = vmatmul.mubr.msk.f32.gmra.mrb[62].mxu1 %vm496_vm1, %v491_v43 }
 0x290   : > { %v2750_v44 = vpop.f32.mrb[0].mxu1 }
 0x291   : > { %v2752_v45 = vpop.f32.mrb[1].mxu1 }
 0x292   : > { %v850_v46 = vmax.f32 %v2750_v44, %v2752_v45 }
 0x294   : > { %851 = vmax.xlane.f32.xlu1 %v850_v46  ;;  %v2756_v47 = vpop.f32.mrb[2].mxu1 }
 0x295   : > { %v2758_v48 = vpop.f32.mrb[3].mxu1 }
 0x296   : > { %v853_v49 = vmax.f32 %v2756_v47, %v2758_v48 }
 0x298   : > { %854 = vmax.xlane.f32.xlu1 %v853_v49  ;;  %v2762_v50 = vpop.f32.mrb[4].mxu1 }
 0x299   : > { %v2764_v51 = vpop.f32.mrb[5].mxu1 }
 0x29a   : > { %v856_v52 = vmax.f32 %v2762_v50, %v2764_v51 }
 0x29c   : > { %857 = vmax.xlane.f32.xlu1 %v856_v52  ;;  %v2768_v53 = vpop.f32.mrb[6].mxu1 }
 0x29d   : > { %v2770_v54 = vpop.f32.mrb[7].mxu1 }
 0x29e   : > { %v859_v55 = vmax.f32 %v2768_v53, %v2770_v54 }
 0x2a0   : > { %860 = vmax.xlane.f32.xlu1 %v859_v55  ;;  %v2774_v56 = vpop.f32.mrb[8].mxu1 }
 0x2a1   : > { %v2776_v57 = vpop.f32.mrb[9].mxu1 }
 0x2a2   : > { %v862_v58 = vmax.f32 %v2774_v56, %v2776_v57 }
 0x2a4   : > { %863 = vmax.xlane.f32.xlu1 %v862_v58  ;;  %v2780_v59 = vpop.f32.mrb[10].mxu1 }
 0x2a5   : > { %v2782_v60 = vpop.f32.mrb[11].mxu1 }
 0x2a6   : > { %v865_v61 = vmax.f32 %v2780_v59, %v2782_v60 }
 0x2a8   : > { %866 = vmax.xlane.f32.xlu1 %v865_v61  ;;  %v2786_v62 = vpop.f32.mrb[12].mxu1 }
 0x2a9   : > { %v2788_v63 = vpop.f32.mrb[13].mxu1 }
 0x2aa   : > { %v868_v0 = vmax.f32 %v2786_v62, %v2788_v63 }
 0x2ac   : > { %869 = vmax.xlane.f32.xlu1 %v868_v0  ;;  %v2792_v1 = vpop.f32.mrb[14].mxu1 }
 0x2ad   : > { %v2794_v2 = vpop.f32.mrb[15].mxu1 }
 0x2ae   : > { %v871_v3 = vmax.f32 %v2792_v1, %v2794_v2 }
 0x2b0   : > { %872 = vmax.xlane.f32.xlu1 %v871_v3  ;;  %v2800_v6 = vpop.f32.mrb[16].mxu1 }
 0x2b1   : > { %v2802_v7 = vpop.f32.mrb[17].mxu1 }
 0x2b2   : > { %v874_v8 = vmax.f32 %v2800_v6, %v2802_v7 }
 0x2b4   : > { %875 = vmax.xlane.f32.xlu1 %v874_v8  ;;  %v2806_v9 = vpop.f32.mrb[18].mxu1 }
 0x2b5   : > { %v2808_v10 = vpop.f32.mrb[19].mxu1 }
 0x2b6   : > { %v877_v11 = vmax.f32 %v2806_v9, %v2808_v10 }
 0x2b8   : > { %878 = vmax.xlane.f32.xlu1 %v877_v11  ;;  %v2812_v12 = vpop.f32.mrb[20].mxu1 }
 0x2b9   : > { %v2814_v13 = vpop.f32.mrb[21].mxu1 }
 0x2ba   : > { %v880_v14 = vmax.f32 %v2812_v12, %v2814_v13 }
 0x2bc   : > { %881 = vmax.xlane.f32.xlu1 %v880_v14  ;;  %v2818_v15 = vpop.f32.mrb[22].mxu1 }
 0x2bd   : > { %v2820_v16 = vpop.f32.mrb[23].mxu1 }
 0x2be   : > { %v883_v17 = vmax.f32 %v2818_v15, %v2820_v16 }
 0x2c0   : > { %884 = vmax.xlane.f32.xlu1 %v883_v17  ;;  %v2824_v18 = vpop.f32.mrb[24].mxu1 }
 0x2c1   : > { %v2826_v19 = vpop.f32.mrb[25].mxu1 }
 0x2c2   : > { %v886_v20 = vmax.f32 %v2824_v18, %v2826_v19 }
 0x2c4   : > { %887 = vmax.xlane.f32.xlu1 %v886_v20  ;;  %v2830_v21 = vpop.f32.mrb[26].mxu1 }
 0x2c5   : > { %v2832_v22 = vpop.f32.mrb[27].mxu1 }
 0x2c6   : > { %v889_v23 = vmax.f32 %v2830_v21, %v2832_v22 }
 0x2c8   : > { %890 = vmax.xlane.f32.xlu1 %v889_v23  ;;  %v2836_v24 = vpop.f32.mrb[28].mxu1 }
 0x2c9   : > { %v2838_v25 = vpop.f32.mrb[29].mxu1 }
 0x2ca   : > { %v892_v26 = vmax.f32 %v2836_v24, %v2838_v25 }
 0x2cc   : > { %893 = vmax.xlane.f32.xlu1 %v892_v26  ;;  %v2842_v27 = vpop.f32.mrb[30].mxu1 }
 0x2cd   : > { %v2844_v28 = vpop.f32.mrb[31].mxu1 }
 0x2ce   : > { %v895_v29 = vmax.f32 %v2842_v27, %v2844_v28 }
 0x2d0   : > { %896 = vmax.xlane.f32.xlu1 %v895_v29  ;;  %v2848_v30 = vpop.f32.mrb[32].mxu1 }
 0x2d1   : > { %v2850_v31 = vpop.f32.mrb[33].mxu1 }
 0x2d2   : > { %v898_v32 = vmax.f32 %v2848_v30, %v2850_v31 }
 0x2d4   : > { %899 = vmax.xlane.f32.xlu1 %v898_v32  ;;  %v2854_v33 = vpop.f32.mrb[34].mxu1 }
 0x2d5   : > { %v2856_v34 = vpop.f32.mrb[35].mxu1 }
 0x2d6   : > { %v901_v35 = vmax.f32 %v2854_v33, %v2856_v34 }
 0x2d8   : > { %902 = vmax.xlane.f32.xlu0 %v901_v35  ;;  %v2860_v36 = vpop.f32.mrb[36].mxu1 }
 0x2d9   : > { %v2862_v37 = vpop.f32.mrb[37].mxu1 }
 0x2da   : > { %v904_v38 = vmax.f32 %v2860_v36, %v2862_v37 }
 0x2dc   : > { %905 = vmax.xlane.f32.xlu1 %v904_v38  ;;  %v2866_v39 = vpop.f32.mrb[38].mxu1 }
 0x2dd   : > { %v2868_v40 = vpop.f32.mrb[39].mxu1 }
 0x2de   : > { %v907_v41 = vmax.f32 %v2866_v39, %v2868_v40 }
 0x2e0   : > { %908 = vmax.xlane.f32.xlu1 %v907_v41  ;;  %v2872_v42 = vpop.f32.mrb[40].mxu1 }
 0x2e1   : > { %v2874_v43 = vpop.f32.mrb[41].mxu1 }
 0x2e2   : > { %v910_v46 = vmax.f32 %v2872_v42, %v2874_v43 }
 0x2e4   : > { %911 = vmax.xlane.f32.xlu1 %v910_v46  ;;  %v2878_v49 = vpop.f32.mrb[42].mxu1 }
 0x2e5   : > { %v2880_v52 = vpop.f32.mrb[43].mxu1 }
 0x2e6   : > { %v913_v55 = vmax.f32 %v2878_v49, %v2880_v52 }
 0x2e8   : > { %914 = vmax.xlane.f32.xlu1 %v913_v55  ;;  %v2884_v58 = vpop.f32.mrb[44].mxu1 }
 0x2e9   : > { %v2886_v61 = vpop.f32.mrb[45].mxu1 }
 0x2ea   : > { %v916_v0 = vmax.f32 %v2884_v58, %v2886_v61 }
 0x2ec   : > { %917 = vmax.xlane.f32.xlu1 %v916_v0  ;;  %v2890_v3 = vpop.f32.mrb[46].mxu1 }
 0x2ed   : > { %v2892_v4 = vpop.f32.mrb[47].mxu1 }
 0x2ee   : > { %v919_v5 = vmax.f32 %v2890_v3, %v2892_v4 }
 0x2f0   : > { %920 = vmax.xlane.f32.xlu1 %v919_v5  ;;  %v2896_v8 = vpop.f32.mrb[48].mxu1 }
 0x2f1   : > { %v2898_v11 = vpop.f32.mrb[49].mxu1 }
 0x2f2   : > { %v922_v14 = vmax.f32 %v2896_v8, %v2898_v11 }
 0x2f4   : > { %923 = vmax.xlane.f32.xlu1 %v922_v14  ;;  %v2902_v17 = vpop.f32.mrb[50].mxu1 }
 0x2f5   : > { %3315 = vst [vmem:[#allocation12_spill] sm:$0xff] %v2902_v17  ;;  %v2904_v20 = vpop.f32.mrb[51].mxu1 }
 0x2f6   : > { %3316 = vst [vmem:[#allocation13_spill] sm:$0xff] %v2904_v20  ;;  %v925_v23 = vmax.f32 %v2902_v17, %v2904_v20 }
 0x2f8   : > { %926 = vmax.xlane.f32.xlu1 %v925_v23  ;;  %v2908_v26 = vpop.f32.mrb[52].mxu1 }
 0x2f9   : > { %3317 = vst [vmem:[#allocation14_spill] sm:$0xff] %v2908_v26  ;;  %v2910_v29 = vpop.f32.mrb[53].mxu1 }
 0x2fa   : > { %3318 = vst [vmem:[#allocation15_spill] sm:$0xff] %v2910_v29  ;;  %v928_v32 = vmax.f32 %v2908_v26, %v2910_v29 }
 0x2fc   : > { %929 = vmax.xlane.f32.xlu1 %v928_v32  ;;  %v2914_v35 = vpop.f32.mrb[54].mxu1 }
 0x2fd   : > { %3319 = vst [vmem:[#allocation16_spill] sm:$0xff] %v2914_v35  ;;  %v2916_v38 = vpop.f32.mrb[55].mxu1 }
 0x2fe   : > { %3320 = vst [vmem:[#allocation17_spill] sm:$0xff] %v2916_v38  ;;  %v931_v41 = vmax.f32 %v2914_v35, %v2916_v38 }
 0x300   : > { %932 = vmax.xlane.f32.xlu1 %v931_v41  ;;  %v2920_v46 = vpop.f32.mrb[56].mxu1 }
 0x301   : > { %3321 = vst [vmem:[#allocation18_spill] sm:$0xff] %v2920_v46  ;;  %v2922_v55 = vpop.f32.mrb[57].mxu1 }
 0x302   : > { %3322 = vst [vmem:[#allocation19_spill] sm:$0xff] %v2922_v55  ;;  %v934_v0 = vmax.f32 %v2920_v46, %v2922_v55 }
 0x304   : > { %935 = vmax.xlane.f32.xlu1 %v934_v0  ;;  %v2926_v5 = vpop.f32.mrb[58].mxu1 }
 0x305   : > { %3323 = vst [vmem:[#allocation20_spill] sm:$0xff] %v2926_v5  ;;  %v2928_v14 = vpop.f32.mrb[59].mxu1 }
 0x306   : > { %3324 = vst [vmem:[#allocation21_spill] sm:$0xff] %v2928_v14  ;;  %v937_v23 = vmax.f32 %v2926_v5, %v2928_v14 }
 0x308   : > { %938 = vmax.xlane.f32.xlu1 %v937_v23  ;;  %v2932_v32 = vpop.f32.mrb[60].mxu1 }
 0x309   : > { %3325 = vst [vmem:[#allocation22_spill] sm:$0xff] %v2932_v32  ;;  %v2934_v38 = vpop.f32.mrb[61].mxu1 }
 0x30a   : > { %3326 = vst [vmem:[#allocation23_spill] sm:$0xff] %v2934_v38  ;;  %v940_v41 = vmax.f32 %v2932_v32, %v2934_v38 }
 0x30c   : > { %941 = vmax.xlane.f32.xlu1 %v940_v41  ;;  %v2938_v35 = vpop.f32.mrb[62].mxu1 }
 0x30d   : > { %v2940_v55 = vpop.f32.mrb[63].mxu1 }
 0x30e   : > { %3327 = vst [vmem:[#allocation24_spill] sm:$0xff] %v2940_v55  ;;  %v943_v0 = vmax.f32 %v2938_v35, %v2940_v55 }
 0x310   : > { %944 = vmax.xlane.f32.xlu1 %v943_v0 }
 0x321   : > { %v852_v46 = vpop.xlane.xlu1 %851 }
 0x322   : > { %v946_v14 = vsub.f32 %v2750_v44, %v852_v46  ;;  %v947_v23 = vsub.f32 %v2752_v45, %v852_v46 }
 0x324   : > { %v1010_v5 = vmul.f32 1.442695, %v946_v14  ;;  %v1012_v29 = vmul.f32 1.442695, %v947_v23 }
 0x325   : > { %v855_v26 = vpop.xlane.xlu1 %854 }
 0x326   : > { %2117 = vpow2.f32 %v1010_v5  ;;  %v948_v38 = vsub.f32 %v2756_v47, %v855_v26  ;;  %v949_v41 = vsub.f32 %v2758_v48, %v855_v26 }
 0x327   : > { %2119 = vpow2.f32 %v1012_v29 }
 0x328   : > { %v1014_v32 = vmul.f32 1.442695, %v948_v38  ;;  %v1016_v20 = vmul.f32 1.442695, %v949_v41 }
 0x329   : > { %v858_v17 = vpop.xlane.xlu1 %857 }
 0x32a   : > { %2121 = vpow2.f32 %v1014_v32  ;;  %v950_v0 = vsub.f32 %v2762_v50, %v858_v17  ;;  %v951_v55 = vsub.f32 %v2764_v51, %v858_v17 }
 0x32b   : > { %2123 = vpow2.f32 %v1016_v20 }
 0x32c   : > { %v1018_v44 = vmul.f32 1.442695, %v950_v0  ;;  %v1020_v45 = vmul.f32 1.442695, %v951_v55 }
 0x32d   : > { %v861_v46 = vpop.xlane.xlu1 %860 }
 0x32e   : > { %2125 = vpow2.f32 %v1018_v44  ;;  %v952_v5 = vsub.f32 %v2768_v53, %v861_v46  ;;  %v953_v47 = vsub.f32 %v2770_v54, %v861_v46 }
 0x32f   : > { %2127 = vpow2.f32 %v1020_v45 }
 0x330   : > { %v2118_v48 = vpop.eup %2117  ;;  %v1022_v26 = vmul.f32 1.442695, %v952_v5  ;;  %v1024_v29 = vmul.f32 1.442695, %v953_v47 }
 0x331   : > { %v2120_v38 = vpop.eup %2119  ;;  %v864_v14 = vpop.xlane.xlu1 %863 }
 0x332   : > { %2129 = vpow2.f32 %v1022_v26  ;;  %1298 = vmatprep.mubr.f32.mxu0 %v2120_v38  ;;  %v954_v50 = vsub.f32 %v2774_v56, %v864_v14  ;;  %v955_v51 = vsub.f32 %v2776_v57, %v864_v14  ;;  %v1138_v17 = vadd.f32 %v2120_v38, %v2118_v48 }
 0x333   : > { %2131 = vpow2.f32 %v1024_v29  ;;  %1299 = vmatmul.mubr.f32.vlgmr.msra.gmra.mrb[2].mxu0 %v2118_v48 }
 0x334   : > { %v2122_v20 = vpop.eup %2121  ;;  %v1026_v55 = vmul.f32 1.442695, %v954_v50  ;;  %v1028_v53 = vmul.f32 1.442695, %v955_v51  ;;  %1139 = vadd.xlane.f32.xlu1 %v1138_v17 }
 0x335   : > { %v2124_v54 = vpop.eup %2123  ;;  %v867_v32 = vpop.xlane.xlu1 %866 }
 0x336   : > { %2133 = vpow2.f32 %v1026_v55  ;;  %1303 = vmatprep.mubr.f32.mxu0 %v2124_v54  ;;  %v956_v23 = vsub.f32 %v2780_v59, %v867_v32  ;;  %v957_v41 = vsub.f32 %v2782_v60, %v867_v32  ;;  %v1141_v0 = vadd.f32 %v2124_v54, %v2122_v20 }
 0x337   : > { %2135 = vpow2.f32 %v1028_v53  ;;  %1304 = vmatmul.mubr.f32.gmra.mrb[4].mxu0 %v2122_v20 }
 0x338   : > { %v2126_v56 = vpop.eup %2125  ;;  %v1030_v57 = vmul.f32 1.442695, %v956_v23  ;;  %v1032_v44 = vmul.f32 1.442695, %v957_v41  ;;  %1142 = vadd.xlane.f32.xlu1 %v1141_v0 }
 0x339   : > { %v2128_v45 = vpop.eup %2127  ;;  %v870_v46 = vpop.xlane.xlu1 %869 }
 0x33a   : > { %2137 = vpow2.f32 %v1030_v57  ;;  %1308 = vmatprep.mubr.f32.mxu0 %v2128_v45  ;;  %v958_v5 = vsub.f32 %v2786_v62, %v870_v46  ;;  %v959_v47 = vsub.f32 %v2788_v63, %v870_v46  ;;  %v1144_v48 = vadd.f32 %v2128_v45, %v2126_v56 }
 0x33b   : > { %2139 = vpow2.f32 %v1032_v44  ;;  %1309 = vmatmul.mubr.f32.gmra.mrb[6].mxu0 %v2126_v56 }
 0x33c   : > { %v2130_v59 = vpop.eup %2129  ;;  %v1034_v60 = vmul.f32 1.442695, %v958_v5  ;;  %v1036_v26 = vmul.f32 1.442695, %v959_v47  ;;  %1145 = vadd.xlane.f32.xlu1 %v1144_v48 }
 0x33d   : > { %v2132_v29 = vpop.eup %2131  ;;  %v873_v38 = vpop.xlane.xlu1 %872 }
 0x33e   : > { %2141 = vpow2.f32 %v1034_v60  ;;  %1313 = vmatprep.mubr.f32.mxu0 %v2132_v29  ;;  %v960_v14 = vsub.f32 %v2792_v1, %v873_v38  ;;  %v961_v50 = vsub.f32 %v2794_v2, %v873_v38  ;;  %v1147_v51 = vadd.f32 %v2132_v29, %v2130_v59 }
 0x33f   : > { %2143 = vpow2.f32 %v1036_v26  ;;  %1314 = vmatmul.mubr.f32.gmra.mrb[8].mxu0 %v2130_v59 }
 0x340   : > { %v2134_v62 = vpop.eup %2133  ;;  %v1038_v63 = vmul.f32 1.442695, %v960_v14  ;;  %v1040_v17 = vmul.f32 1.442695, %v961_v50  ;;  %1148 = vadd.xlane.f32.xlu1 %v1147_v51 }
 0x341   : > { %v2136_v20 = vpop.eup %2135  ;;  %v876_v55 = vpop.xlane.xlu1 %875 }
 0x342   : > { %2145 = vpow2.f32 %v1038_v63  ;;  %1318 = vmatprep.mubr.f32.mxu0 %v2136_v20  ;;  %v962_v53 = vsub.f32 %v2800_v6, %v876_v55  ;;  %v963_v54 = vsub.f32 %v2802_v7, %v876_v55  ;;  %v1150_v32 = vadd.f32 %v2136_v20, %v2134_v62 }
 0x343   : > { %2147 = vpow2.f32 %v1040_v17  ;;  %1319 = vmatmul.mubr.f32.gmra.mrb[10].mxu0 %v2134_v62 }
 0x344   : > { %v2138_v1 = vpop.eup %2137  ;;  %v1042_v2 = vmul.f32 1.442695, %v962_v53  ;;  %v1044_v23 = vmul.f32 1.442695, %v963_v54  ;;  %1151 = vadd.xlane.f32.xlu1 %v1150_v32 }
 0x345   : > { %v2140_v41 = vpop.eup %2139  ;;  %v879_v0 = vpop.xlane.xlu1 %878 }
 0x346   : > { %2149 = vpow2.f32 %v1042_v2  ;;  %1323 = vmatprep.mubr.f32.mxu0 %v2140_v41  ;;  %v964_v56 = vsub.f32 %v2806_v9, %v879_v0  ;;  %v965_v57 = vsub.f32 %v2808_v10, %v879_v0  ;;  %v2964_v44 = vadd.f32 %v2140_v41, %v2138_v1 }
 0x347   : > { %2151 = vpow2.f32 %v1044_v23  ;;  %1324 = vmatmul.mubr.f32.gmra.mrb[12].mxu0 %v2138_v1 }
 0x348   : > { %v2142_v6 = vpop.eup %2141  ;;  %v1046_v7 = vmul.f32 1.442695, %v964_v56  ;;  %v1048_v45 = vmul.f32 1.442695, %v965_v57 }
 0x349   : > { %v2144_v46 = vpop.eup %2143  ;;  %v882_v5 = vpop.xlane.xlu1 %881 }
 0x34a   : > { %2153 = vpow2.f32 %v1046_v7  ;;  %1328 = vmatprep.mubr.f32.mxu0 %v2144_v46  ;;  %v966_v47 = vsub.f32 %v2812_v12, %v882_v5  ;;  %v967_v48 = vsub.f32 %v2814_v13, %v882_v5  ;;  %v2968_v59 = vadd.f32 %v2144_v46, %v2142_v6 }
 0x34b   : > { %2155 = vpow2.f32 %v1048_v45  ;;  %1329 = vmatmul.mubr.f32.gmra.mrb[14].mxu0 %v2142_v6 }
 0x34c   : > { %v2146_v9 = vpop.eup %2145  ;;  %v1050_v10 = vmul.f32 1.442695, %v966_v47  ;;  %v1052_v60 = vmul.f32 1.442695, %v967_v48 }
 0x34d   : > { %v2148_v26 = vpop.eup %2147  ;;  %v885_v29 = vpop.xlane.xlu1 %884 }
 0x34e   : > { %2157 = vpow2.f32 %v1050_v10  ;;  %1333 = vmatprep.mubr.f32.mxu0 %v2148_v26  ;;  %v968_v38 = vsub.f32 %v2818_v15, %v885_v29  ;;  %v969_v14 = vsub.f32 %v2820_v16, %v885_v29  ;;  %v2972_v50 = vadd.f32 %v2148_v26, %v2146_v9 }
 0x34f   : > { %2159 = vpow2.f32 %v1052_v60  ;;  %1334 = vmatmul.mubr.f32.gmra.mrb[16].mxu0 %v2146_v9 }
 0x350   : > { %v2150_v12 = vpop.eup %2149  ;;  %v1054_v13 = vmul.f32 1.442695, %v968_v38  ;;  %v1056_v51 = vmul.f32 1.442695, %v969_v14 }
 0x351   : > { %v2152_v62 = vpop.eup %2151  ;;  %v888_v63 = vpop.xlane.xlu1 %887 }
 0x352   : > { %2161 = vpow2.f32 %v1054_v13  ;;  %1338 = vmatprep.mubr.f32.mxu0 %v2152_v62  ;;  %v970_v17 = vsub.f32 %v2824_v18, %v888_v63  ;;  %v971_v20 = vsub.f32 %v2826_v19, %v888_v63  ;;  %v2976_v55 = vadd.f32 %v2152_v62, %v2150_v12 }
 0x353   : > { %2163 = vpow2.f32 %v1056_v51  ;;  %1339 = vmatmul.mubr.f32.gmra.mrb[18].mxu0 %v2150_v12 }
 0x354   : > { %v2154_v15 = vpop.eup %2153  ;;  %v1058_v16 = vmul.f32 1.442695, %v970_v17  ;;  %v1060_v53 = vmul.f32 1.442695, %v971_v20 }
 0x355   : > { %v2156_v54 = vpop.eup %2155  ;;  %v891_v32 = vpop.xlane.xlu1 %890 }
 0x356   : > { %2165 = vpow2.f32 %v1058_v16  ;;  %1343 = vmatprep.mubr.f32.mxu0 %v2156_v54  ;;  %v972_v1 = vsub.f32 %v2830_v21, %v891_v32  ;;  %v973_v2 = vsub.f32 %v2832_v22, %v891_v32  ;;  %v2980_v23 = vadd.f32 %v2156_v54, %v2154_v15 }
 0x357   : > { %2167 = vpow2.f32 %v1060_v53  ;;  %1344 = vmatmul.mubr.f32.gmra.mrb[20].mxu0 %v2154_v15 }
 0x358   : > { %v2158_v18 = vpop.eup %2157  ;;  %v1062_v19 = vmul.f32 1.442695, %v972_v1  ;;  %v1064_v41 = vmul.f32 1.442695, %v973_v2 }
 0x359   : > { %v2160_v0 = vpop.eup %2159  ;;  %v894_v56 = vpop.xlane.xlu1 %893 }
 0x35a   : > { %2169 = vpow2.f32 %v1062_v19  ;;  %1348 = vmatprep.mubr.f32.mxu0 %v2160_v0  ;;  %v974_v57 = vsub.f32 %v2836_v24, %v894_v56  ;;  %v975_v6 = vsub.f32 %v2838_v25, %v894_v56  ;;  %v2984_v7 = vadd.f32 %v2160_v0, %v2158_v18 }
 0x35b   : > { %2171 = vpow2.f32 %v1064_v41  ;;  %1349 = vmatmul.mubr.f32.gmra.mrb[22].mxu0 %v2158_v18 }
 0x35c   : > { %v2162_v21 = vpop.eup %2161  ;;  %v1066_v22 = vmul.f32 1.442695, %v974_v57  ;;  %v1068_v45 = vmul.f32 1.442695, %v975_v6 }
 0x35d   : > { %v2164_v46 = vpop.eup %2163  ;;  %v897_v5 = vpop.xlane.xlu1 %896 }
 0x35e   : > { %2173 = vpow2.f32 %v1066_v22  ;;  %1353 = vmatprep.mubr.f32.mxu0 %v2164_v46  ;;  %v976_v47 = vsub.f32 %v2842_v27, %v897_v5  ;;  %v977_v48 = vsub.f32 %v2844_v28, %v897_v5  ;;  %v2988_v9 = vadd.f32 %v2164_v46, %v2162_v21 }
 0x35f   : > { %2175 = vpow2.f32 %v1068_v45  ;;  %1354 = vmatmul.mubr.f32.gmra.mrb[24].mxu0 %v2162_v21 }
 0x360   : > { %v2166_v24 = vpop.eup %2165  ;;  %v1070_v25 = vmul.f32 1.442695, %v976_v47  ;;  %v1072_v10 = vmul.f32 1.442695, %v977_v48 }
 0x361   : > { %v2168_v60 = vpop.eup %2167  ;;  %v900_v26 = vpop.xlane.xlu1 %899 }
 0x362   : > { %2177 = vpow2.f32 %v1070_v25  ;;  %1358 = vmatprep.mubr.f32.mxu0 %v2168_v60  ;;  %v978_v29 = vsub.f32 %v2848_v30, %v900_v26  ;;  %v979_v38 = vsub.f32 %v2850_v31, %v900_v26  ;;  %v2992_v14 = vadd.f32 %v2168_v60, %v2166_v24 }
 0x363   : > { %2179 = vpow2.f32 %v1072_v10  ;;  %1359 = vmatmul.mubr.f32.gmra.mrb[26].mxu0 %v2166_v24 }
 0x364   : > { %v2170_v27 = vpop.eup %2169  ;;  %v1074_v28 = vmul.f32 1.442695, %v978_v29  ;;  %v1076_v12 = vmul.f32 1.442695, %v979_v38 }
 0x365   : > { %v2172_v13 = vpop.eup %2171  ;;  %v903_v51 = vpop.xlane.xlu0 %902 }
 0x366   : > { %2181 = vpow2.f32 %v1074_v28  ;;  %1363 = vmatprep.mubr.f32.mxu0 %v2172_v13  ;;  %v980_v62 = vsub.f32 %v2854_v33, %v903_v51  ;;  %v981_v63 = vsub.f32 %v2856_v34, %v903_v51  ;;  %v2996_v17 = vadd.f32 %v2172_v13, %v2170_v27 }
 0x367   : > { %2183 = vpow2.f32 %v1076_v12  ;;  %1364 = vmatmul.mubr.f32.gmra.mrb[28].mxu0 %v2170_v27 }
 0x368   : > { %v2174_v30 = vpop.eup %2173  ;;  %v1078_v31 = vmul.f32 1.442695, %v980_v62  ;;  %v1080_v20 = vmul.f32 1.442695, %v981_v63 }
 0x369   : > { %v2176_v15 = vpop.eup %2175  ;;  %v906_v16 = vpop.xlane.xlu1 %905 }
 0x36a   : > { %2185 = vpow2.f32 %v1078_v31  ;;  %1368 = vmatprep.mubr.f32.mxu0 %v2176_v15  ;;  %v982_v53 = vsub.f32 %v2860_v36, %v906_v16  ;;  %v983_v54 = vsub.f32 %v2862_v37, %v906_v16  ;;  %v3000_v32 = vadd.f32 %v2176_v15, %v2174_v30 }
 0x36b   : > { %2187 = vpow2.f32 %v1080_v20  ;;  %1369 = vmatmul.mubr.f32.gmra.mrb[30].mxu0 %v2174_v30 }
 0x36c   : > { %v2178_v33 = vpop.eup %2177  ;;  %v1082_v34 = vmul.f32 1.442695, %v982_v53  ;;  %v1084_v1 = vmul.f32 1.442695, %v983_v54 }
 0x36d   : > { %v2180_v2 = vpop.eup %2179  ;;  %v909_v18 = vpop.xlane.xlu1 %908 }
 0x36e   : > { %2189 = vpow2.f32 %v1082_v34  ;;  %1373 = vmatprep.mubr.f32.mxu0 %v2180_v2  ;;  %v984_v19 = vsub.f32 %v2866_v39, %v909_v18  ;;  %v985_v41 = vsub.f32 %v2868_v40, %v909_v18  ;;  %v3004_v0 = vadd.f32 %v2180_v2, %v2178_v33  ;;  %v3329_v18 = vld [vmem:[#allocation13_spill] sm:$0xff] }
 0x36f   : > { %2191 = vpow2.f32 %v1084_v1  ;;  %1374 = vmatmul.mubr.f32.gmra.mrb[32].mxu0 %v2178_v33  ;;  %v3328_v1 = vld [vmem:[#allocation12_spill] sm:$0xff] }
 0x370   : > { %v2182_v36 = vpop.eup %2181  ;;  %v1086_v37 = vmul.f32 1.442695, %v984_v19  ;;  %v1088_v56 = vmul.f32 1.442695, %v985_v41 }
 0x371   : > { %v2184_v57 = vpop.eup %2183  ;;  %v912_v6 = vpop.xlane.xlu1 %911 }
 0x372   : > { %2193 = vpow2.f32 %v1086_v37  ;;  %1378 = vmatprep.mubr.f32.mxu0 %v2184_v57  ;;  %v986_v21 = vsub.f32 %v2872_v42, %v912_v6  ;;  %v987_v22 = vsub.f32 %v2874_v43, %v912_v6  ;;  %v1186_v45 = vadd.f32 %v2184_v57, %v2182_v36  ;;  %v3330_v57 = vld [vmem:[#allocation14_spill] sm:$0xff] }
 0x373   : > { %2195 = vpow2.f32 %v1088_v56  ;;  %1379 = vmatmul.mubr.f32.gmra.mrb[34].mxu0 %v2182_v36 }
 0x374   : > { %v2186_v39 = vpop.eup %2185  ;;  %v1090_v40 = vmul.f32 1.442695, %v986_v21  ;;  %v1092_v46 = vmul.f32 1.442695, %v987_v22  ;;  %1187 = vadd.xlane.f32.xlu1 %v1186_v45  ;;  %v3331_v21 = vld [vmem:[#allocation15_spill] sm:$0xff] }
 0x375   : > { %v2188_v5 = vpop.eup %2187  ;;  %v915_v47 = vpop.xlane.xlu1 %914 }
 0x376   : > { %2197 = vpow2.f32 %v1090_v40  ;;  %v988_v48 = vsub.f32 %v2878_v49, %v915_v47  ;;  %v989_v24 = vsub.f32 %v2880_v52, %v915_v47  ;;  %1383 = vmatprep.mubr.f32.mxu0 %v2188_v5  ;;  %v1189_v25 = vadd.f32 %v2188_v5, %v2186_v39 }
 0x377   : > { %2199 = vpow2.f32 %v1092_v46  ;;  %1384 = vmatmul.mubr.f32.gmra.mrb[36].mxu0 %v2186_v39 }
 0x378   : > { %v2190_v42 = vpop.eup %2189  ;;  %v1094_v43 = vmul.f32 1.442695, %v988_v48  ;;  %v1096_v10 = vmul.f32 1.442695, %v989_v24  ;;  %1190 = vadd.xlane.f32.xlu1 %v1189_v25  ;;  %v3332_v48 = vld [vmem:[#allocation16_spill] sm:$0xff]  ;;  %v3333_v25 = vld [vmem:[#allocation17_spill] sm:$0xff] }
 0x379   : > { %v2192_v60 = vpop.eup %2191  ;;  %v918_v26 = vpop.xlane.xlu1 %917 }
 0x37a   : > { %2201 = vpow2.f32 %v1094_v43  ;;  %v990_v29 = vsub.f32 %v2884_v58, %v918_v26  ;;  %v991_v38 = vsub.f32 %v2886_v61, %v918_v26  ;;  %1388 = vmatprep.mubr.f32.mxu0 %v2192_v60  ;;  %v1192_v27 = vadd.f32 %v2192_v60, %v2190_v42 }
 0x37b   : > { %2203 = vpow2.f32 %v1096_v10  ;;  %1389 = vmatmul.mubr.f32.gmra.mrb[38].mxu0 %v2190_v42 }
 0x37c   : > { %v2194_v49 = vpop.eup %2193  ;;  %v1098_v52 = vmul.f32 1.442695, %v990_v29  ;;  %v1100_v28 = vmul.f32 1.442695, %v991_v38  ;;  %1193 = vadd.xlane.f32.xlu1 %v1192_v27 }
 0x37d   : > { %v2196_v12 = vpop.eup %2195  ;;  %v921_v13 = vpop.xlane.xlu1 %920 }
 0x37e   : > { %2205 = vpow2.f32 %v1098_v52  ;;  %v992_v51 = vsub.f32 %v2890_v3, %v921_v13  ;;  %v993_v62 = vsub.f32 %v2892_v4, %v921_v13  ;;  %1393 = vmatprep.mubr.f32.mxu0 %v2196_v12  ;;  %v1195_v63 = vadd.f32 %v2196_v12, %v2194_v49 }
 0x37f   : > { %2207 = vpow2.f32 %v1100_v28  ;;  %1394 = vmatmul.mubr.f32.gmra.mrb[40].mxu0 %v2194_v49  ;;  %v3335_v49 = vld [vmem:[#allocation19_spill] sm:$0xff] }
 0x380   : > { %v2198_v58 = vpop.eup %2197  ;;  %v1102_v61 = vmul.f32 1.442695, %v992_v51  ;;  %v1104_v30 = vmul.f32 1.442695, %v993_v62  ;;  %1196 = vadd.xlane.f32.xlu1 %v1195_v63  ;;  %v3336_v63 = vld [vmem:[#allocation20_spill] sm:$0xff] }
 0x381   : > { %v2200_v31 = vpop.eup %2199  ;;  %v924_v20 = vpop.xlane.xlu1 %923 }
 0x382   : > { %2209 = vpow2.f32 %v1102_v61  ;;  %v994_v15 = vsub.f32 %v2896_v8, %v924_v20  ;;  %v995_v16 = vsub.f32 %v2898_v11, %v924_v20  ;;  %1398 = vmatprep.mubr.f32.mxu0 %v2200_v31  ;;  %v1198_v53 = vadd.f32 %v2200_v31, %v2198_v58  ;;  %v3337_v61 = vld [vmem:[#allocation21_spill] sm:$0xff] }
 0x383   : > { %2211 = vpow2.f32 %v1104_v30  ;;  %1399 = vmatmul.mubr.f32.gmra.mrb[42].mxu0 %v2198_v58 }
 0x384   : > { %v2202_v3 = vpop.eup %2201  ;;  %v1106_v4 = vmul.f32 1.442695, %v994_v15  ;;  %v1108_v54 = vmul.f32 1.442695, %v995_v16  ;;  %1199 = vadd.xlane.f32.xlu1 %v1198_v53 }
 0x385   : > { %v2204_v33 = vpop.eup %2203  ;;  %v927_v34 = vpop.xlane.xlu1 %926 }
 0x386   : > { %2213 = vpow2.f32 %v1106_v4  ;;  %v996_v2 = vsub.f32 %v3328_v1, %v927_v34  ;;  %v997_v19 = vsub.f32 %v3329_v18, %v927_v34  ;;  %1403 = vmatprep.mubr.f32.mxu0 %v2204_v33  ;;  %v1201_v41 = vadd.f32 %v2204_v33, %v2202_v3 }
 0x387   : > { %2215 = vpow2.f32 %v1108_v54  ;;  %1404 = vmatmul.mubr.f32.gmra.mrb[44].mxu0 %v2202_v3  ;;  %v3339_v54 = vld [vmem:[#allocation23_spill] sm:$0xff] }
 0x388   : > { %v2206_v8 = vpop.eup %2205  ;;  %v1110_v11 = vmul.f32 1.442695, %v996_v2  ;;  %v1112_v36 = vmul.f32 1.442695, %v997_v19  ;;  %1202 = vadd.xlane.f32.xlu1 %v1201_v41 }
 0x389   : > { %v2208_v37 = vpop.eup %2207  ;;  %v930_v56 = vpop.xlane.xlu1 %929 }
 0x38a   : > { %2217 = vpow2.f32 %v1110_v11  ;;  %v998_v6 = vsub.f32 %v3330_v57, %v930_v56  ;;  %v999_v22 = vsub.f32 %v3331_v21, %v930_v56  ;;  %1408 = vmatprep.mubr.f32.mxu0 %v2208_v37  ;;  %v1204_v45 = vadd.f32 %v2208_v37, %v2206_v8 }
 0x38b   : > { %2219 = vpow2.f32 %v1112_v36  ;;  %1409 = vmatmul.mubr.f32.gmra.mrb[46].mxu0 %v2206_v8  ;;  %v3340_v8 = vld [vmem:[#allocation24_spill] sm:$0xff] }
 0x38c   : > { %v2210_v39 = vpop.eup %2209  ;;  %v1114_v40 = vmul.f32 1.442695, %v998_v6  ;;  %v1116_v46 = vmul.f32 1.442695, %v999_v22  ;;  %1205 = vadd.xlane.f32.xlu0 %v1204_v45  ;;  %1154 = vadd.xlane.f32.xlu1 %v2964_v44  ;;  %v3334_v44 = vld [vmem:[#allocation18_spill] sm:$0xff] }
 0x38d   : > { %v2212_v5 = vpop.eup %2211  ;;  %v933_v47 = vpop.xlane.xlu1 %932 }
 0x38e   : > { %2221 = vpow2.f32 %v1114_v40  ;;  %v1000_v24 = vsub.f32 %v3332_v48, %v933_v47  ;;  %v1001_v42 = vsub.f32 %v3333_v25, %v933_v47  ;;  %1413 = vmatprep.mubr.f32.mxu0 %v2212_v5  ;;  %v1207_v43 = vadd.f32 %v2212_v5, %v2210_v39 }
 0x38f   : > { %2223 = vpow2.f32 %v1116_v46  ;;  %1414 = vmatmul.mubr.f32.gmra.mrb[48].mxu0 %v2210_v39 }
 0x390   : > { %v2214_v10 = vpop.eup %2213  ;;  %v1118_v60 = vmul.f32 1.442695, %v1000_v24  ;;  %v1120_v26 = vmul.f32 1.442695, %v1001_v42  ;;  %1157 = vadd.xlane.f32.xlu0 %v2968_v59  ;;  %1208 = vadd.xlane.f32.xlu1 %v1207_v43 }
 0x391   : > { %v2216_v29 = vpop.eup %2215  ;;  %v936_v38 = vpop.xlane.xlu1 %935 }
 0x392   : > { %2225 = vpow2.f32 %v1118_v60  ;;  %v1002_v27 = vsub.f32 %v3334_v44, %v936_v38  ;;  %v1003_v52 = vsub.f32 %v3335_v49, %v936_v38  ;;  %1418 = vmatprep.mubr.f32.mxu0 %v2216_v29  ;;  %v1210_v28 = vadd.f32 %v2216_v29, %v2214_v10 }
 0x393   : > { %2227 = vpow2.f32 %v1120_v26  ;;  %1419 = vmatmul.mubr.f32.gmra.mrb[50].mxu0 %v2214_v10 }
 0x394   : > { %v2218_v12 = vpop.eup %2217  ;;  %v1122_v13 = vmul.f32 1.442695, %v1002_v27  ;;  %v1124_v51 = vmul.f32 1.442695, %v1003_v52  ;;  %1211 = vadd.xlane.f32.xlu0 %v1210_v28  ;;  %1160 = vadd.xlane.f32.xlu1 %v2972_v50  ;;  %v3338_v50 = vld [vmem:[#allocation22_spill] sm:$0xff] }
 0x395   : > { %v2220_v62 = vpop.eup %2219  ;;  %v939_v59 = vpop.xlane.xlu1 %938 }
 0x396   : > { %2229 = vpow2.f32 %v1122_v13  ;;  %v1004_v58 = vsub.f32 %v3336_v63, %v939_v59  ;;  %v1005_v30 = vsub.f32 %v3337_v61, %v939_v59  ;;  %1423 = vmatprep.mubr.f32.mxu0 %v2220_v62  ;;  %v1213_v31 = vadd.f32 %v2220_v62, %v2218_v12  ;;  %v1525_v61 = vld [vmem:[%s3285_s5] sm:$0xff] }
 0x397   : > { %2231 = vpow2.f32 %v1124_v51  ;;  %1424 = vmatmul.mubr.f32.gmra.mrb[52].mxu0 %v2218_v12 }
 0x398   : > { %v2222_v20 = vpop.eup %2221  ;;  %v1126_v15 = vmul.f32 1.442695, %v1004_v58  ;;  %v1128_v16 = vmul.f32 1.442695, %v1005_v30  ;;  %1163 = vadd.xlane.f32.xlu0 %v2976_v55  ;;  %1214 = vadd.xlane.f32.xlu1 %v1213_v31  ;;  %v1526_v30 = vld [vmem:[%s3285_s5 + $0x8] sm:$0xff]  ;;  %v2466_v31 = vmov 0  }
 0x399   : > { %v2224_v53 = vpop.eup %2223  ;;  %v942_v3 = vpop.xlane.xlu1 %941  ;;  %2115 = vset.pattern.permute.xlu0 %v2466_v31  ;;  %2116 = vset.pattern.permute.xlu1 %v2466_v31 }
 0x39a   : > { %2233 = vpow2.f32 %v1126_v15  ;;  %v1006_v4 = vsub.f32 %v3338_v50, %v942_v3  ;;  %v1007_v33 = vsub.f32 %v3339_v54, %v942_v3  ;;  %1428 = vmatprep.mubr.f32.mxu0 %v2224_v53  ;;  %v1216_v34 = vadd.f32 %v2224_v53, %v2222_v20 }
 0x39b   : > { %2235 = vpow2.f32 %v1128_v16  ;;  %1429 = vmatmul.mubr.f32.gmra.mrb[54].mxu0 %v2222_v20 }
 0x39c   : > { %v2226_v1 = vpop.eup %2225  ;;  %v1130_v2 = vmul.f32 1.442695, %v1006_v4  ;;  %v1132_v18 = vmul.f32 1.442695, %v1007_v33  ;;  %1217 = vadd.xlane.f32.xlu0 %v1216_v34  ;;  %1166 = vadd.xlane.f32.xlu1 %v2980_v23 }
 0x39d   : > { %v2228_v19 = vpop.eup %2227  ;;  %v945_v55 = vpop.xlane.xlu1 %944 }
 0x39e   : > { %2237 = vpow2.f32 %v1130_v2  ;;  %v1008_v41 = vsub.f32 %v2938_v35, %v945_v55  ;;  %v1009_v11 = vsub.f32 %v3340_v8, %v945_v55  ;;  %1433 = vmatprep.mubr.f32.mxu0 %v2228_v19  ;;  %v1219_v36 = vadd.f32 %v2228_v19, %v2226_v1 }
 0x39f   : > { %2239 = vpow2.f32 %v1132_v18  ;;  %1434 = vmatmul.mubr.f32.gmra.mrb[56].mxu0 %v2226_v1 }
 0x3a0   : > { %v2230_v37 = vpop.eup %2229  ;;  %v1134_v56 = vmul.f32 1.442695, %v1008_v41  ;;  %v1136_v57 = vmul.f32 1.442695, %v1009_v11  ;;  %1169 = vadd.xlane.f32.xlu0 %v2984_v7  ;;  %1220 = vadd.xlane.f32.xlu1 %v1219_v36 }
 0x3a1   : > { %v2232_v6 = vpop.eup %2231 }
 0x3a2   : > { %2241 = vpow2.f32 %v1134_v56  ;;  %1438 = vmatprep.mubr.f32.mxu0 %v2232_v6  ;;  %v1222_v23 = vadd.f32 %v2232_v6, %v2230_v37 }
 0x3a3   : > { %2243 = vpow2.f32 %v1136_v57  ;;  %1439 = vmatmul.mubr.f32.gmra.mrb[58].mxu0 %v2230_v37 }
 0x3a4   : > { %v2234_v21 = vpop.eup %2233  ;;  %1223 = vadd.xlane.f32.xlu0 %v1222_v23  ;;  %1172 = vadd.xlane.f32.xlu1 %v2988_v9 }
 0x3a5   : > { %v2236_v35 = vpop.eup %2235 }
 0x3a6   : > { %1443 = vmatprep.mubr.f32.mxu0 %v2236_v35  ;;  %v1225_v22 = vadd.f32 %v2236_v35, %v2234_v21 }
 0x3a7   : > { %1444 = vmatmul.mubr.f32.gmra.mrb[60].mxu0 %v2234_v21 }
 0x3a8   : > { %v2238_v45 = vpop.eup %2237  ;;  %1175 = vadd.xlane.f32.xlu0 %v2992_v14  ;;  %1226 = vadd.xlane.f32.xlu1 %v1225_v22 }
 0x3a9   : > { %v2240_v7 = vpop.eup %2239 }
 0x3aa   : > { %1448 = vmatprep.mubr.f32.mxu0 %v2240_v7  ;;  %v1228_v39 = vadd.f32 %v2240_v7, %v2238_v45 }
 0x3ab   : > { %1449 = vmatmul.mubr.f32.gmra.mrb[62].mxu0 %v2238_v45 }
 0x3ac   : > { %v2242_v40 = vpop.eup %2241  ;;  %1229 = vadd.xlane.f32.xlu0 %v1228_v39  ;;  %1178 = vadd.xlane.f32.xlu1 %v2996_v17 }
 0x3ad   : > { %v2244_v46 = vpop.eup %2243 }
 0x3ae   : > { %1453 = vmatprep.mubr.f32.mxu0 %v2244_v46  ;;  %v1231_v5 = vadd.f32 %v2244_v46, %v2242_v40 }
 0x3af   : > { %1454 = vmatmul.mubr.f32.gmra.mrb[64].mxu0 %v2242_v40 }
 0x3b0   : > { %1181 = vadd.xlane.f32.xlu0 %v3000_v32  ;;  %1232 = vadd.xlane.f32.xlu1 %v1231_v5  ;;  %v3048_v32 = vld [vmem:[%s3284_s4] sm:$0xff] }
 0x3b1   : > { %1986 = vmatprep.mubr.msk.f32.mxu1 %vm496_vm1, %v3048_v32 }
 0x3b4   : > { %1184 = vadd.xlane.f32.xlu1 %v3004_v0 }
 0x3c1   : > { %v1140_v9 = vpop.xlane.xlu1 %1139 }
 0x3c2   : > { %2245 = vrcp.f32 %v1140_v9 }
 0x3c5   : > { %v1143_v14 = vpop.xlane.xlu1 %1142  ;;  %1534 = vperm.xlu1 %2116, %v1526_v30  }
 0x3c6   : > { %2247 = vrcp.f32 %v1143_v14  ;;  %1529 = vperm.xlu0 %2115, %v1525_v61  }
 0x3c9   : > { %v1146_v47 = vpop.xlane.xlu1 %1145 }
 0x3ca   : > { %2249 = vrcp.f32 %v1146_v47 }
 0x3cc   : > { %v2246_v0 = vpop.eup %2245 }
 0x3cd   : > { %v1149_v48 = vpop.xlane.xlu1 %1148 }
 0x3ce   : > { %2251 = vrcp.f32 %v1149_v48 }
 0x3d0   : > { %v2248_v60 = vpop.eup %2247 }
 0x3d1   : > { %v1152_v24 = vpop.xlane.xlu1 %1151 }
 0x3d2   : > { %2253 = vrcp.f32 %v1152_v24 }
 0x3d4   : > { %v2250_v12 = vpop.eup %2249 }
 0x3d8   : > { %v2252_v51 = vpop.eup %2251 }
 0x3dc   : > { %v2254_v41 = vpop.eup %2253 }
 0x401   : > { %v3041_v25 = vpop.xlane.xlu1 %1187 }
 0x405   : > { %v3043_v42 = vpop.xlane.xlu1 %1190 }
 0x406   : > { %v1300_v17 = vpop.f32.mrb[2].mxu0 }
 0x407   : > { %v1302_v43 = vpop.f32.mrb[3].mxu0  ;;  %v3054_v29 = vmul.f32 %v2246_v0, %v1300_v17 }
 0x409   : > { %v3050_v10 = vpop.xlane.xlu1 %1193 }
 0x40a   : > { %v1305_v26 = vpop.f32.mrb[4].mxu0 }
 0x40b   : > { %v3056_v38 = vmul.f32 %v2248_v60, %v1305_v26  ;;  %v1307_v44 = vpop.f32.mrb[5].mxu0 }
 0x40d   : > { %v1997_v27 = vpack.c.bf16 %v3056_v38, %v3054_v29  ;;  %v3060_v49 = vpop.xlane.xlu1 %1196 }
 0x40e   : > { %v1310_v52 = vpop.f32.mrb[6].mxu0 }
 0x40f   : > { %v1312_v28 = vpop.f32.mrb[7].mxu0  ;;  %v3064_v59 = vmul.f32 %v2250_v12, %v1310_v52 }
 0x411   : > { %v3062_v13 = vpop.xlane.xlu1 %1199 }
 0x412   : > { %v1315_v62 = vpop.f32.mrb[8].mxu0 }
 0x413   : > { %v3066_v63 = vmul.f32 %v2252_v51, %v1315_v62  ;;  %v1317_v58 = vpop.f32.mrb[9].mxu0 }
 0x415   : > { %v2003_v20 = vpack.c.bf16 %v3066_v63, %v3064_v59  ;;  %v3076_v15 = vpop.xlane.xlu1 %1202 }
 0x416   : > { %v1320_v16 = vpop.f32.mrb[10].mxu0 }
 0x417   : > { %v1322_v53 = vpop.f32.mrb[11].mxu0  ;;  %v3084_v36 = vmul.f32 %v2254_v41, %v1320_v16 }
 0x419   : > { %v1155_v3 = vpop.xlane.xlu1 %1154  ;;  %v3078_v50 = vpop.xlane.xlu0 %1205 }
 0x41a   : > { %2255 = vrcp.f32 %v1155_v3  ;;  %v1325_v4 = vpop.f32.mrb[12].mxu0 }
 0x41b   : > { %v1327_v54 = vpop.f32.mrb[13].mxu0 }
 0x41d   : > { %v3080_v33 = vpop.xlane.xlu1 %1208  ;;  %v1158_v34 = vpop.xlane.xlu0 %1157 }
 0x41e   : > { %v1330_v1 = vpop.f32.mrb[14].mxu0  ;;  %2257 = vrcp.f32 %v1158_v34 }
 0x41f   : > { %v1332_v2 = vpop.f32.mrb[15].mxu0 }
 0x421   : > { %v1161_v18 = vpop.xlane.xlu1 %1160  ;;  %v3082_v19 = vpop.xlane.xlu0 %1211 }
 0x422   : > { %2259 = vrcp.f32 %v1161_v18  ;;  %v1335_v55 = vpop.f32.mrb[16].mxu0 }
 0x423   : > { %v1337_v8 = vpop.f32.mrb[17].mxu0 }
 0x424   : > { %v2256_v11 = vpop.eup %2255 }
 0x425   : > { %v3086_v37 = vmul.f32 %v2256_v11, %v1325_v4  ;;  %v3088_v56 = vpop.xlane.xlu1 %1214  ;;  %v1164_v57 = vpop.xlane.xlu0 %1163 }
 0x426   : > { %v1340_v6 = vpop.f32.mrb[18].mxu0  ;;  %2261 = vrcp.f32 %v1164_v57 }
 0x427   : > { %v2009_v23 = vpack.c.bf16 %v3086_v37, %v3084_v36  ;;  %v1342_v21 = vpop.f32.mrb[19].mxu0 }
 0x428   : > { %v2258_v45 = vpop.eup %2257 }
 0x429   : > { %v1167_v35 = vpop.xlane.xlu1 %1166  ;;  %v3092_v22 = vpop.xlane.xlu0 %1217  ;;  %v3094_v46 = vmul.f32 %v2258_v45, %v1330_v1 }
 0x42a   : > { %2263 = vrcp.f32 %v1167_v35  ;;  %v1345_v7 = vpop.f32.mrb[20].mxu0 }
 0x42b   : > { %v1347_v39 = vpop.f32.mrb[21].mxu0 }
 0x42c   : > { %v2260_v40 = vpop.eup %2259 }
 0x42d   : > { %v3096_v5 = vmul.f32 %v2260_v40, %v1335_v55  ;;  %v3098_v9 = vpop.xlane.xlu1 %1220  ;;  %v1170_v14 = vpop.xlane.xlu0 %1169 }
 0x42e   : > { %v1350_v47 = vpop.f32.mrb[22].mxu0  ;;  %2265 = vrcp.f32 %v1170_v14 }
 0x42f   : > { %v2015_v48 = vpack.c.bf16 %v3096_v5, %v3094_v46  ;;  %v1352_v24 = vpop.f32.mrb[23].mxu0 }
 0x430   : > { %v2262_v0 = vpop.eup %2261 }
 0x431   : > { %v1173_v17 = vpop.xlane.xlu1 %1172  ;;  %v3102_v43 = vpop.xlane.xlu0 %1223  ;;  %v3104_v52 = vmul.f32 %v2262_v0, %v1340_v6 }
 0x432   : > { %2267 = vrcp.f32 %v1173_v17  ;;  %v1355_v60 = vpop.f32.mrb[24].mxu0 }
 0x433   : > { %v1357_v26 = vpop.f32.mrb[25].mxu0 }
 0x434   : > { %v2264_v44 = vpop.eup %2263 }
 0x435   : > { %v3106_v28 = vmul.f32 %v2264_v44, %v1345_v7  ;;  %v3108_v12 = vpop.xlane.xlu1 %1226  ;;  %v1176_v51 = vpop.xlane.xlu0 %1175 }
 0x436   : > { %v1360_v62 = vpop.f32.mrb[26].mxu0  ;;  %2269 = vrcp.f32 %v1176_v51 }
 0x437   : > { %v2021_v58 = vpack.c.bf16 %v3106_v28, %v3104_v52  ;;  %v1362_v61 = vpop.f32.mrb[27].mxu0 }
 0x438   : > { %v2266_v16 = vpop.eup %2265 }
 0x439   : > { %v1179_v30 = vpop.xlane.xlu1 %1178  ;;  %v3112_v31 = vpop.xlane.xlu0 %1229  ;;  %v3114_v54 = vmul.f32 %v2266_v16, %v1350_v47 }
 0x43a   : > { %2271 = vrcp.f32 %v1179_v30  ;;  %v1365_v53 = vpop.f32.mrb[28].mxu0 }
 0x43b   : > { %v1367_v3 = vpop.f32.mrb[29].mxu0  ;;  %2273 = vrcp.f32 %v3041_v25 }
 0x43c   : > { %v2268_v4 = vpop.eup %2267  ;;  %2275 = vrcp.f32 %v3043_v42 }
 0x43d   : > { %v3116_v34 = vmul.f32 %v2268_v4, %v1355_v60  ;;  %v3118_v1 = vpop.xlane.xlu1 %1232  ;;  %v1182_v2 = vpop.xlane.xlu0 %1181 }
 0x43e   : > { %v1370_v18 = vpop.f32.mrb[30].mxu0  ;;  %2277 = vrcp.f32 %v1182_v2 }
 0x43f   : > { %v2027_v55 = vpack.c.bf16 %v3116_v34, %v3114_v54  ;;  %v1372_v41 = vpop.f32.mrb[31].mxu0 }
 0x440   : > { %v2270_v11 = vpop.eup %2269 }
 0x441   : > { %v1185_v8 = vpop.xlane.xlu1 %1184  ;;  %v3124_v35 = vmul.f32 %v2270_v11, %v1360_v62 }
 0x442   : > { %2279 = vrcp.f32 %v1185_v8  ;;  %v1375_v57 = vpop.f32.mrb[32].mxu0 }
 0x443   : > { %v1377_v6 = vpop.f32.mrb[33].mxu0  ;;  %2281 = vrcp.f32 %v3050_v10 }
 0x444   : > { %v2272_v21 = vpop.eup %2271  ;;  %2283 = vrcp.f32 %v3060_v49 }
 0x445   : > { %v3126_v45 = vmul.f32 %v2272_v21, %v1365_v53  ;;  %v2274_v39 = vpop.eup %2273  ;;  %2285 = vrcp.f32 %v3062_v13  ;;  %v1535_v26 = vpop.permute.xlu1 %1534 }
 0x446   : > { %v1380_v7 = vpop.f32.mrb[34].mxu0  ;;  %v2276_v40 = vpop.eup %2275  ;;  %2287 = vrcp.f32 %v3076_v15 }
 0x447   : > { %v2033_v25 = vpack.c.bf16 %v3126_v45, %v3124_v35  ;;  %v1382_v42 = vpop.f32.mrb[35].mxu0  ;;  %v1492_v24 = vmul.f32 %v2274_v39, %v1380_v7  ;;  %2289 = vrcp.f32 %v3078_v50  ;;  %v1524_v35 = vld [vmem:[%s3284_s4 + $0x8] sm:$0xff]  ;;  %v1530_v45 = vpop.permute.xlu0 %1529 }
 0x448   : > { %v2278_v14 = vpop.eup %2277  ;;  %2291 = vrcp.f32 %v3080_v33 }
 0x449   : > { %v3138_v10 = vmul.f32 %v2278_v14, %v1370_v18  ;;  %2293 = vrcp.f32 %v3082_v19 }
 0x44a   : > { %v1385_v47 = vpop.f32.mrb[36].mxu0  ;;  %2295 = vrcp.f32 %v3088_v56 }
 0x44b   : > { %v1494_v17 = vmul.f32 %v2276_v40, %v1385_v47  ;;  %v1387_v0 = vpop.f32.mrb[37].mxu0  ;;  %2297 = vrcp.f32 %v3092_v22 }
 0x44c   : > { %v2280_v60 = vpop.eup %2279  ;;  %2299 = vrcp.f32 %v3098_v9 }
 0x44d   : > { %v3140_v44 = vmul.f32 %v2280_v60, %v1375_v57  ;;  %v1994_v51 = vpack.c.bf16 %v1494_v17, %v1492_v24  ;;  %v2282_v30 = vpop.eup %2281  ;;  %2301 = vrcp.f32 %v3102_v43 }
 0x44e   : > { %v1390_v62 = vpop.f32.mrb[38].mxu0  ;;  %v2284_v16 = vpop.eup %2283  ;;  %2303 = vrcp.f32 %v3108_v12 }
 0x44f   : > { %v2039_v49 = vpack.c.bf16 %v3140_v44, %v3138_v10  ;;  %v1392_v61 = vpop.f32.mrb[39].mxu0  ;;  %1996 = vmatprep.subr.msk.bf16.mxu1 %vm3134_vm2, %v1994_v51  ;;  %v1496_v3 = vmul.f32 %v2282_v30, %v1390_v62  ;;  %v2286_v29 = vpop.eup %2285  ;;  %2305 = vrcp.f32 %v3112_v31 }
 0x450   : > { %1999 = vmatpush3.bf16.xpose.msk.msra.mxu1 %vm3134_vm2, %v1997_v27  ;;  %v2288_v38 = vpop.eup %2287  ;;  %2307 = vrcp.f32 %v3118_v1 }
 0x451   : > { %v2290_v59 = vpop.eup %2289 }
 0x452   : > { %v1395_v53 = vpop.f32.mrb[40].mxu0  ;;  %v2292_v63 = vpop.eup %2291 }
 0x453   : > { %v1498_v13 = vmul.f32 %v2284_v16, %v1395_v53  ;;  %v1397_v4 = vpop.f32.mrb[41].mxu0  ;;  %v2294_v36 = vpop.eup %2293 }
 0x454   : > { %v2296_v37 = vpop.eup %2295 }
 0x455   : > { %v2000_v2 = vpack.c.bf16 %v1498_v13, %v1496_v3  ;;  %v2298_v46 = vpop.eup %2297 }
 0x456   : > { %v1400_v18 = vpop.f32.mrb[42].mxu0  ;;  %v2300_v5 = vpop.eup %2299 }
 0x457   : > { %v1402_v41 = vpop.f32.mrb[43].mxu0  ;;  %2002 = vmatprep.subr.msk.bf16.mxu1 %vm3134_vm2, %v2000_v2  ;;  %v1500_v15 = vmul.f32 %v2286_v29, %v1400_v18  ;;  %v2302_v52 = vpop.eup %2301  ;;  %v2310_v18 = vld [vmem:[%s2659_s7 + $0x8] sm:$0xff] }
 0x458   : > { %2005 = vmatpush3.bf16.xpose.msk.msra.mxu1 %vm3134_vm2, %v2003_v20  ;;  %v2304_v28 = vpop.eup %2303 }
 0x459   : > { %v2306_v54 = vpop.eup %2305 }
 0x45a   : > { %v1405_v27 = vpop.f32.mrb[44].mxu0  ;;  %v2308_v34 = vpop.eup %2307 }
 0x45b   : > { %v1502_v8 = vmul.f32 %v2288_v38, %v1405_v27  ;;  %v1407_v11 = vpop.f32.mrb[45].mxu0 }
 0x45c   : > { %v2312_v11 = vld [vmem:[%s2659_s7 + $0x18] sm:$0xff] }
 0x45d   : > { %v2006_v57 = vpack.c.bf16 %v1502_v8, %v1500_v15  ;;  %v2311_v15 = vld [vmem:[%s2659_s7 + $0x10] sm:$0xff] }
 0x45e   : > { %v1410_v50 = vpop.f32.mrb[46].mxu0 }
 0x45f   : > { %v1412_v6 = vpop.f32.mrb[47].mxu0  ;;  %2008 = vmatprep.subr.msk.bf16.mxu1 %vm3134_vm2, %v2006_v57  ;;  %v1504_v33 = vmul.f32 %v2290_v59, %v1410_v50 }
 0x460   : > { %2011 = vmatpush3.bf16.xpose.msk.msra.mxu1 %vm3134_vm2, %v2009_v23 }
 0x462   : > { %v1415_v20 = vpop.f32.mrb[48].mxu0 }
 0x463   : > { %v1506_v21 = vmul.f32 %v2292_v63, %v1415_v20  ;;  %v1417_v7 = vpop.f32.mrb[49].mxu0 }
 0x465   : > { %v2012_v42 = vpack.c.bf16 %v1506_v21, %v1504_v33 }
 0x466   : > { %v1420_v19 = vpop.f32.mrb[50].mxu0 }
 0x467   : > { %v1422_v39 = vpop.f32.mrb[51].mxu0  ;;  %2014 = vmatprep.subr.msk.bf16.mxu1 %vm3134_vm2, %v2012_v42  ;;  %v1508_v23 = vmul.f32 %v2294_v36, %v1420_v19 }
 0x468   : > { %2017 = vmatpush3.bf16.xpose.msk.msra.mxu1 %vm3134_vm2, %v2015_v48 }
 0x46a   : > { %v1425_v56 = vpop.f32.mrb[52].mxu0 }
 0x46b   : > { %v1510_v40 = vmul.f32 %v2296_v37, %v1425_v56  ;;  %v1427_v14 = vpop.f32.mrb[53].mxu0 }
 0x46d   : > { %v2018_v47 = vpack.c.bf16 %v1510_v40, %v1508_v23 }
 0x46e   : > { %v1430_v22 = vpop.f32.mrb[54].mxu0 }
 0x46f   : > { %v1432_v24 = vpop.f32.mrb[55].mxu0  ;;  %2020 = vmatprep.subr.msk.bf16.mxu1 %vm3134_vm2, %v2018_v47  ;;  %v1512_v48 = vmul.f32 %v2298_v46, %v1430_v22 }
 0x470   : > { %2023 = vmatpush3.bf16.xpose.msk.msra.mxu1 %vm3134_vm2, %v2021_v58 }
 0x472   : > { %v1435_v9 = vpop.f32.mrb[56].mxu0 }
 0x473   : > { %v1514_v17 = vmul.f32 %v2300_v5, %v1435_v9  ;;  %v1437_v0 = vpop.f32.mrb[57].mxu0 }
 0x475   : > { %v2024_v60 = vpack.c.bf16 %v1514_v17, %v1512_v48 }
 0x476   : > { %v1440_v43 = vpop.f32.mrb[58].mxu0 }
 0x477   : > { %v1442_v51 = vpop.f32.mrb[59].mxu0  ;;  %2026 = vmatprep.subr.msk.bf16.mxu1 %vm3134_vm2, %v2024_v60  ;;  %v1516_v58 = vmul.f32 %v2302_v52, %v1440_v43 }
 0x478   : > { %2029 = vmatpush3.bf16.xpose.msk.msra.mxu1 %vm3134_vm2, %v2027_v55 }
 0x47a   : > { %v1445_v12 = vpop.f32.mrb[60].mxu0 }
 0x47b   : > { %v1518_v62 = vmul.f32 %v2304_v28, %v1445_v12  ;;  %v1447_v61 = vpop.f32.mrb[61].mxu0 }
 0x47d   : > { %v2030_v30 = vpack.c.bf16 %v1518_v62, %v1516_v58 }
 0x47e   : > { %v1450_v31 = vpop.f32.mrb[62].mxu0 }
 0x47f   : > { %v1452_v16 = vpop.f32.mrb[63].mxu0  ;;  %2032 = vmatprep.subr.msk.bf16.mxu1 %vm3134_vm2, %v2030_v30  ;;  %v1520_v55 = vmul.f32 %v2306_v54, %v1450_v31 }
 0x480   : > { %2035 = vmatpush3.bf16.xpose.msk.msra.mxu1 %vm3134_vm2, %v2033_v25 }
 0x482   : > { %v1455_v1 = vpop.f32.mrb[64].mxu0 }
 0x483   : > { %v1522_v53 = vmul.f32 %v2308_v34, %v1455_v1  ;;  %v1457_v3 = vpop.f32.mrb[65].mxu0 }
 0x485   : > { %v2036_v13 = vpack.c.bf16 %v1522_v53, %v1520_v55 }
 0x487   : > { %2038 = vmatprep.subr.msk.bf16.mxu1 %vm3134_vm2, %v2036_v13 }
 0x488   : > { %2041 = vmatpush3.bf16.xpose.msk.msra.mxu1 %vm3134_vm2, %v2039_v49  ;;  %v2309_v49 = vld [vmem:[%s2659_s7] sm:$0xff] }
 0x48f   : > { %1987 = vmatmul.mubr.msk.f32.vlgmr.msra.gmra.mrb[64].mxu1 %vm496_vm1, %v3048_v32 }
 0x490   : > { %1988 = vmatprep.mubr.msk.f32.mxu1 %vm496_vm1, %v1524_v35 }
 0x493   : > { %1989 = vmatmul.mubr.msk.f32.gmra.mrb[66].mxu1 %vm496_vm1, %v1524_v35 }
 0x562   : > { %v1705_v25 = vpop.f32.mrb[64].mxu1 }
 0x563   : > { %v1706_v4 = vadd.f32 %v1705_v25, %v1530_v45  ;;  %v1707_v10 = vpop.f32.mrb[65].mxu1 }
 0x564   : > { %v1708_v44 = vadd.f32 %v1707_v10, %v1530_v45 }
 0x565   : > { %v1716_v2 = vadd.f32 %v2309_v49, %v1706_v4 }
 0x566   : > { %v1717_v32 = vadd.f32 %v2310_v18, %v1708_v44  ;;  %v1711_v41 = vpop.f32.mrb[66].mxu1 }
 0x567   : > { %1720 = vst [vmem:[%s340_s18] sm:$0xff] %v1716_v2  ;;  %v1712_v29 = vadd.f32 %v1711_v41, %v1535_v26  ;;  %v1713_v38 = vpop.f32.mrb[67].mxu1 }
 0x568   : > { %1721 = vst [vmem:[%s340_s18 + $0x8] sm:$0xff] %v1717_v32  ;;  %v1714_v27 = vadd.f32 %v1713_v38, %v1535_v26 }
 0x569   : > { %v1718_v8 = vadd.f32 %v2311_v15, %v1712_v29 }
 0x56a   : > { %v1719_v57 = vadd.f32 %v2312_v11, %v1714_v27 }
 0x56b   : > { %1722 = vst [vmem:[%s340_s18 + $0x10] sm:$0xff] %v1718_v8 }
 0x56c   : > { %1723 = vst [vmem:[%s340_s18 + $0x18] sm:$0xff] %v1719_v57 }
 0x56d   : > { %2386 = shalt.err (!%p2383_p1)
}
 0x56e   : > { %s2387_s7 = scalar_lea.hbm %s3230_s13, 512  ;;  %s2391_s9 = scalar_lea.hbm %s3286_s6, 1024 }
 0x56f   : > { %p2388_p6 = scmp.ne.s32.totalorder %s3230_s13, %s2387_s7  ;;  %p2392_p13 = scmp.lt.u32.totalorder %s3230_s13, %s3286_s6 }
 0x570   : > { %p2393_p8 = scmp.lt.u32.totalorder %s2391_s9, %s2387_s7  ;;  %p2395_p3 = scmp.lt.u32.totalorder %s2387_s7, %s3230_s13 }
 0x571   : > { %p2389_p2 = pnand %p2388_p6, %p3343_p11 }
 0x572   : > { %p2394_p0 = por %p2393_p8, %p2392_p13 }
 0x573   : > { %p2390_p5 = pneg %p2389_p2 }
 0x574   : > { %p2396_p4 = por %p2395_p3, %p2394_p0 }
 0x576   : > { %p2397_p7 = pnand %p2396_p4, %p2390_p5 }
 0x578   : > { %2400 = shalt.err (!%p2397_p7)
}
 0x579   : > { %s2468_s19 = smov 256   ;;  %s2469_s28 = smov 16  }
 0x57a   : > { %2046 = dma.vmem_to_hbm [thread:$0]  (%p3343_p11), %s3224_s16, 512, %s3230_s13, %s1725_s24, %s2468_s19, %s2468_s19, %s2469_s28  }
 0x57b PF: > { %s1755_s0 = sand.u32 1, %s2439_s21   ;;  %p3344_p10 = scmp.ne.s32.totalorder %s3308_s12, 0 }
 0x57c   : > { %p3345_p12 = scmp.ge.s32.totalorder %s2459_s26, 2  ;;  %s1756_s15 = scalar_lea.sflag [#allocation4], %s1755_s0 }
 0x57e   : > { %p2056_p9 = pnand %p3345_p12, %p3344_p10 }
 0x580   : > { %2434 = dma.done.wait (!%p2056_p9), %s1756_s15, 512  }
 0x581   : > { %2436 = vsyncadd (!%p2056_p9), %s1756_s15, 4294966784  ;;  %s25_s26 = sadd.s32 1, %s2459_s26   ;;  %s3346_s10 = sld [smem:[#allocation11_spill]] }
 0x582   : > { %p22_p1 = scmp.ge.s32.totalorder %s25_s26, 4   ;;  %s3347_s21 = smov %s2443_s22 }
 0x583   : > { %s3348_s22 = smov %s2447_s23  ;;  %s3349_s23 = smov %s2561_s11 }
 0x584   : > { %s3350_s24 = smov %s2455_s25  ;;  %24 = sbr.rel (!%p22_p1) target bundleno = 10 (0xa), region = 105 }
 0x587   : > { %s3351_s25 = smov %s3346_s10 }
 0x58b   :  { %1761 = vsyncpa [#allocation3], 1 }
 0x58c   :  { %1763 = vsyncpa [#allocation3 + $0x1], 1 }
 0x58d   :  { %1764 = vsyncpa [#allocation6], 1 }
 0x58e   :  { %1766 = vsyncpa [#allocation6 + $0x1], 1 }
 0x58f   :  { %1767 = vsyncpa [#allocation4], 1 }
 0x590   :  { %1769 = vsyncpa [#allocation4 + $0x1], 1 }

</bundles_post_ra>
